<compile_context>
chip_gen: v7x
topology: tpu7x:2x2x1
jax: 0.10.0
libtpu: 0.0.40
codegen_flags: <defaults>
</compile_context>

<pallas_src>
import math
import jax
import jax.numpy as jnp
from jax.experimental import pallas as pl
from jax.experimental.pallas import tpu as pltpu


def _round_up(x, m):
    return ((x + m - 1) // m) * m


def _vmem_capacity_bytes():
    try:
        return int(pltpu.get_tpu_info().vmem_capacity_bytes)
    except Exception:
        return 128 * 2**20


# ---------------------------------------------------------------------------
# Kernels (grid = (row_tiles, col_tiles); col axis tiles out_features)
# ---------------------------------------------------------------------------

def _gated_skip_proj_fused_kernel(in_ref, outx_ref, w_lin_ref, w_gate_ref,
                                  w_co_ref, b_ref, o_ref):
    """Projection path, in_features <= out_features (fused gate weight).

    w_lin_ref  = W_lin^T column tile           : (in_f_p, tn)
    w_gate_ref = (W_lin^T @ W_ci^T) column tile: (in_f_p, tn)
    w_co_ref   = W_co^T column tile            : (out_f_p, tn)
    b_ref      = (b_ci + b_co) column tile     : (1, tn), float32
    """
    tn = o_ref.shape[-1]
    col0 = pl.multiple_of(pl.program_id(1) * tn, tn)

    in_x = in_ref[...]                     # native dtype -> MXU fast path
    out_x = outx_ref[...]

    in_p = jnp.dot(in_x, w_lin_ref[...], preferred_element_type=jnp.float32)
    x1 = jnp.dot(in_x, w_gate_ref[...], preferred_element_type=jnp.float32)
    x2 = jnp.dot(out_x, w_co_ref[...], preferred_element_type=jnp.float32)

    z = jax.nn.sigmoid(x1 + x2 + b_ref[...])
    out_cols = outx_ref[:, pl.ds(col0, tn)].astype(jnp.float32)
    o_ref[...] = (z * out_cols + (1.0 - z) * in_p).astype(o_ref.dtype)


def _gated_skip_proj_seq_kernel(in_ref, outx_ref, w_lin_ref, w_ci_ref,
                                w_co_ref, b_ref, o_ref, inp_ref):
    """Projection path, in_features > out_features (sequential form).

    w_lin_ref: full W_lin^T resident in VMEM (in_f_p, out_f_p).
    inp_ref  : f32 scratch (tile_m, out_f_p); in_p computed once per row tile
               (column axis is 'arbitrary', j == 0 runs first for each row).
    """
    tn = o_ref.shape[-1]
    j = pl.program_id(1)
    col0 = pl.multiple_of(j * tn, tn)

    @pl.when(j == 0)
    def _():
        inp_ref[...] = jnp.dot(in_ref[...], w_lin_ref[...],
                               preferred_element_type=jnp.float32)

    out_x = outx_ref[...]
    x1 = jnp.dot(inp_ref[...].astype(w_ci_ref.dtype), w_ci_ref[...],
                 preferred_element_type=jnp.float32)
    x2 = jnp.dot(out_x, w_co_ref[...], preferred_element_type=jnp.float32)

    z = jax.nn.sigmoid(x1 + x2 + b_ref[...])
    out_cols = outx_ref[:, pl.ds(col0, tn)].astype(jnp.float32)
    inp_cols = inp_ref[:, pl.ds(col0, tn)]
    o_ref[...] = (z * out_cols + (1.0 - z) * inp_cols).astype(o_ref.dtype)


def _gated_skip_noproj_kernel(in_ref, outx_ref, w_ci_ref, w_co_ref, b_ref,
                              o_ref):
    """Identity skip path, in_features == out_features."""
    tn = o_ref.shape[-1]
    col0 = pl.multiple_of(pl.program_id(1) * tn, tn)

    in_x = in_ref[...]
    out_x = outx_ref[...]
    x1 = jnp.dot(in_x, w_ci_ref[...], preferred_element_type=jnp.float32)
    x2 = jnp.dot(out_x, w_co_ref[...], preferred_element_type=jnp.float32)

    z = jax.nn.sigmoid(x1 + x2 + b_ref[...])
    out_cols = outx_ref[:, pl.ds(col0, tn)].astype(jnp.float32)
    in_cols = in_ref[:, pl.ds(col0, tn)].astype(jnp.float32)
    o_ref[...] = (z * out_cols + (1.0 - z) * in_cols).astype(o_ref.dtype)


# ---------------------------------------------------------------------------
# One-time parameter preparation (call once, reuse across forward calls)
# ---------------------------------------------------------------------------

def prepare_params(params, in_features, out_features, *, weight_dtype=None,
                   lane_multiple=128, col_tile=None):
    """Transpose to (K, N), optionally fuse, pad feature dims, pre-sum biases.

    weight_dtype : dtype fed to the MXU for the weights.  bfloat16 is
        recommended on v6e/v7x when the model tolerates it (accumulation stays
        f32 via preferred_element_type).  Default keeps the params' dtype.
    lane_multiple: feature padding multiple.  128 is always valid; 256 can
        improve MXU utilisation on v6e/v7x for compute-bound shapes.
    col_tile     : out_features column tile (multiple of lane_multiple).
        None = auto: full width unless the resident weights would crowd VMEM,
        then stream 512-wide column tiles (v7x's 64 MiB is the binding case).
    """
    proj = in_features != out_features
    fused = proj and (in_features <= out_features)
    wdt = (jnp.dtype(weight_dtype) if weight_dtype is not None
           else jnp.dtype(params["w_ci"].dtype))
    w_isz = wdt.itemsize

    out_f_lane = _round_up(out_features, lane_multiple)
    in_f_lane = _round_up(in_features, lane_multiple) if proj else out_f_lane

    # ---- choose the out_features column tile (tn) -------------------------
    if col_tile is not None:
        tn = min(_round_up(col_tile, lane_multiple), out_f_lane)
    else:
        if fused:
            w_full = (2 * in_f_lane + out_f_lane) * out_f_lane * w_isz
        elif proj:
            w_full = (in_f_lane + 2 * out_f_lane) * out_f_lane * w_isz
        else:
            w_full = 2 * out_f_lane * out_f_lane * w_isz
        vmem_cap = _vmem_capacity_bytes()
        # keep (double-buffered) weights under ~1/3 of VMEM, else stream cols
        if 2 * w_full <= vmem_cap // 3 or out_f_lane <= 512:
            tn = out_f_lane
        else:
            tn = max(lane_multiple, _round_up(512, lane_multiple))

    out_f_p = _round_up(out_features, tn)          # multiple of tn (and 128)
    in_f_p = _round_up(in_features, lane_multiple) if proj else out_f_p

    def pad2(a, rows, cols):
        return jnp.pad(a, ((0, rows - a.shape[0]), (0, cols - a.shape[1])))

    w_ci_t = jnp.asarray(params["w_ci"], jnp.float32).T      # (out_f, out_f)
    w_co_t = jnp.asarray(params["w_co"], jnp.float32).T
    bias = (params["b_ci"].astype(jnp.float32)
            + params["b_co"].astype(jnp.float32)).reshape(1, out_features)

    prepared = {
        "proj": proj,
        "fused": fused,
        "in_features": in_features,
        "out_features": out_features,
        "in_f_p": in_f_p,
        "out_f_p": out_f_p,
        "tn": tn,
        "w_co": pad2(w_co_t, out_f_p, out_f_p).astype(wdt),
        "b": pad2(bias, 1, out_f_p),                          # bias stays f32
    }
    if proj:
        w_lin_t = jnp.asarray(params["w_lin"], jnp.float32).T  # (in_f, out_f)
        prepared["w_lin"] = pad2(w_lin_t, in_f_p, out_f_p).astype(wdt)
        if fused:
            # Note: composing the two matmuls re-associates the f32 math (and
            # rounds once if weight_dtype is bf16), so results are equal to the
            # PyTorch two-step path only up to float tolerance.
            w_gate = w_lin_t @ w_ci_t                           # W_lin^T W_ci^T
            prepared["w_gate"] = pad2(w_gate, in_f_p, out_f_p).astype(wdt)
        else:
            prepared["w_ci"] = pad2(w_ci_t, out_f_p, out_f_p).astype(wdt)
    else:
        prepared["w_ci"] = pad2(w_ci_t, out_f_p, out_f_p).astype(wdt)
    return prepared


# ---------------------------------------------------------------------------
# Forward wrapper
# ---------------------------------------------------------------------------

def gated_skip_connection(in_x, out_x, prepared, *, tile_m=None):
    """in_x: (N, in_features), out_x: (N, out_features); `prepared` from
    prepare_params().  Returns (N, out_features)."""
    N, in_f = in_x.shape
    N2, out_f = out_x.shape
    assert N == N2
    assert in_f == prepared["in_features"] and out_f == prepared["out_features"]

    proj = prepared["proj"]
    fused = prepared["fused"]
    in_f_p = prepared["in_f_p"]
    out_f_p = prepared["out_f_p"]
    tn = prepared["tn"]
    grid_n = out_f_p // tn

    # Zero-pad feature (K) dims only: padded K columns must be inert zeros.
    # Rows are NOT padded -- the partial last row block relies on masked output
    # stores and the absence of any cross-row reduction.
    if in_f_p != in_f:
        in_x = jnp.pad(in_x, ((0, 0), (0, in_f_p - in_f)))
    if out_f_p != out_f:
        out_x = jnp.pad(out_x, ((0, 0), (0, out_f_p - out_f)))

    in_isz = jnp.dtype(in_x.dtype).itemsize
    out_isz = jnp.dtype(out_x.dtype).itemsize
    w_isz = jnp.dtype(prepared["w_co"].dtype).itemsize

    # dtype-aware sublane alignment: f32 -> 8, bf16 -> 16, int8/fp8 -> 32.
    row_align = 32 // min(in_isz, out_isz)

    vmem_cap = _vmem_capacity_bytes()
    small_vmem = vmem_cap <= 96 * 2**20          # v7x-class: 64 MiB / TC

    if proj and fused:
        w_tile_elems = (in_f_p + in_f_p + out_f_p) * tn    # w_lin, w_gate, w_co
        resident_bytes = 0
    elif proj:
        w_tile_elems = (out_f_p + out_f_p) * tn            # w_ci, w_co tiles
        resident_bytes = in_f_p * out_f_p * w_isz          # resident W_lin^T
    else:
        w_tile_elems = (out_f_p + out_f_p) * tn
        resident_bytes = 0
    w_tile_bytes = w_tile_elems * w_isz

    # Row tile: generation-aware default.
    if tile_m is None:
        if small_vmem and out_f_p >= 1024:
            tile_m = 256
        elif (not small_vmem) and out_f_p <= 256 and w_tile_bytes <= (4 << 20):
            tile_m = 1024            # single-TC parts: big tiles track HBM BW
        else:
            tile_m = 512
    tile_m = min(tile_m, _round_up(N, row_align))
    tile_m = max(row_align, _round_up(tile_m, row_align))

    def vmem_needed(tm):
        need = 2 * tm * in_f_p * in_isz           # in_x row block (2 buffers)
        need += 2 * tm * out_f_p * out_isz        # out_x row block
        need += 2 * tm * tn * out_isz             # output block
        need += 2 * w_tile_bytes + 2 * tn * 4     # weight + bias tiles
        need += resident_bytes                    # single-buffered resident
        if proj and not fused:
            need += tm * out_f_p * 4              # in_p f32 scratch
        need += 6 * tm * tn * 4                   # f32 intermediates headroom
        return need

    budget = vmem_cap - (8 << 20)                 # leave Mosaic scratch room
    while tile_m > row_align and vmem_needed(tile_m) > budget:
        tile_m = max(row_align, _round_up(tile_m // 2, row_align))
    # TODO(synk): if the weight tiles alone still exceed the budget, shrink
    # col_tile in prepare_params() instead of only shrinking tile_m.

    grid_m = pl.cdiv(N, tile_m)
    # v7x megacore nudge: give both TensorCores work when it costs nothing.
    if small_vmem and grid_m * grid_n == 1 and tile_m > row_align:
        tile_m = max(row_align, _round_up((tile_m + 1) // 2, row_align))
        grid_m = pl.cdiv(N, tile_m)

    vmem_limit = int(min(max(budget, 1 << 20),
                         max(vmem_needed(tile_m) + (4 << 20), 32 << 20)))

    # ---- specs -------------------------------------------------------------
    in_spec = pl.BlockSpec((tile_m, in_f_p), lambda i, j: (i, 0))
    outx_spec = pl.BlockSpec((tile_m, out_f_p), lambda i, j: (i, 0))
    o_spec = pl.BlockSpec((tile_m, tn), lambda i, j: (i, j))
    b_spec = pl.BlockSpec((1, tn), lambda i, j: (0, j))

    def w_col(k_rows):
        return pl.BlockSpec((k_rows, tn), lambda i, j: (0, j))

    if proj and fused:
        kernel = _gated_skip_proj_fused_kernel
        weights = (prepared["w_lin"], prepared["w_gate"], prepared["w_co"],
                   prepared["b"])
        w_specs = [w_col(in_f_p), w_col(in_f_p), w_col(out_f_p), b_spec]
        scratch = []
        dims = ("parallel", "parallel")
    elif proj:
        kernel = _gated_skip_proj_seq_kernel
        weights = (prepared["w_lin"], prepared["w_ci"], prepared["w_co"],
                   prepared["b"])
        w_specs = [pl.BlockSpec(memory_space=pltpu.MemorySpace.VMEM),
                   w_col(out_f_p), w_col(out_f_p), b_spec]
        scratch = [pltpu.VMEM((tile_m, out_f_p), jnp.float32)]
        dims = ("parallel", "arbitrary")     # scratch carried across columns
    else:
        kernel = _gated_skip_noproj_kernel
        weights = (prepared["w_ci"], prepared["w_co"], prepared["b"])
        w_specs = [w_col(out_f_p), w_col(out_f_p), b_spec]
        scratch = []
        dims = ("parallel", "parallel")

    # ---- cost estimate (advisory, helps XLA schedule producers) ------------
    flops = 2 * N * out_f * out_f                       # W_co matmul
    if proj:
        flops += 2 * N * in_f * out_f                   # W_lin
        flops += (2 * N * in_f * out_f) if fused else (2 * N * out_f * out_f)
    else:
        flops += 2 * N * out_f * out_f                  # W_ci
    flops += 6 * N * out_f                              # gate blend
    bytes_accessed = (in_x.size * in_isz + out_x.size * out_isz
                      + sum(int(w.size) * jnp.dtype(w.dtype).itemsize
                            for w in weights)
                      + N * out_f_p * out_isz)
    cost = pl.CostEstimate(flops=int(flops), transcendentals=int(N * out_f),
                           bytes_accessed=int(bytes_accessed))

    out_p = pl.pallas_call(
        kernel,
        out_shape=jax.ShapeDtypeStruct((N, out_f_p), out_x.dtype),
        grid_spec=pltpu.PrefetchScalarGridSpec(
            num_scalar_prefetch=0,
            grid=(grid_m, grid_n),
            in_specs=[in_spec, outx_spec] + w_specs,
            out_specs=o_spec,
            scratch_shapes=scratch,
        ),
        compiler_params=pltpu.CompilerParams(
            dimension_semantics=dims,
            vmem_limit_bytes=vmem_limit,
        ),
        cost_estimate=cost,
    )(in_x, out_x, *weights)

    if out_f_p != out_f:
        out_p = out_p[:, :out_f]
    return out_p


# ---------------------------------------------------------------------------
# Init / reference (mirror the PyTorch module)
# ---------------------------------------------------------------------------

def init_params(key, in_features, out_features, dtype=jnp.float32):
    """Deterministic init mimicking nn.Linear default (uniform +/- 1/sqrt(fan_in))."""
    ks = jax.random.split(key, 5)

    def u(k, shape, fan_in):
        bound = 1.0 / math.sqrt(fan_in)
        return jax.random.uniform(k, shape, dtype, minval=-bound, maxval=bound)

    params = {
        "w_ci": u(ks[1], (out_features, out_features), out_features),
        "b_ci": u(ks[2], (out_features,), out_features),
        "w_co": u(ks[3], (out_features, out_features), out_features),
        "b_co": u(ks[4], (out_features,), out_features),
    }
    if in_features != out_features:
        params["w_lin"] = u(ks[0], (out_features, in_features), in_features)
    return params


def reference_forward(in_x, out_x, params):
    """Pure-JAX reference (mirrors the PyTorch module)."""
    if in_x.shape[-1] != out_x.shape[-1]:
        in_x = in_x @ params["w_lin"].T
    x1 = in_x @ params["w_ci"].T + params["b_ci"]
    x2 = out_x @ params["w_co"].T + params["b_co"]
    z = jax.nn.sigmoid(x1 + x2)
    return z * out_x + (1.0 - z) * in_x


def _check(name, in_x, out_x, params, prepared, atol, rtol):
    out = jax.block_until_ready(gated_skip_connection(in_x, out_x, prepared))
    ref = reference_forward(in_x, out_x, params)
    assert out.shape == ref.shape, name
    o32 = out.astype(jnp.float32)
    r32 = ref.astype(jnp.float32)
    err = float(jnp.max(jnp.abs(o32 - r32)))
    assert bool(jnp.allclose(o32, r32, atol=atol, rtol=rtol)), (name, err)
    return out


if __name__ == "__main__":
    key = jax.random.PRNGKey(0)
    ks = jax.random.split(key, 16)
    N = 200  # deliberately NOT a multiple of the row tile -> masked last block

    # Case 1: projection, in_f < out_f  -> fused gate-weight kernel.
    in_f, out_f = 16, 32
    in_x = jax.random.normal(ks[0], (N, in_f), jnp.float32)
    out_x = jax.random.normal(ks[1], (N, out_f), jnp.float32)
    params = init_params(ks[2], in_f, out_f)
    prepared = prepare_params(params, in_f, out_f)
    _check("proj_fused", in_x, out_x, params, prepared, 2e-3, 2e-3)

    # Case 2: identity skip (in_f == out_f).
    params2 = init_params(ks[3], out_f, out_f)
    in_x2 = jax.random.normal(ks[4], (N, out_f), jnp.float32)
    prepared2 = prepare_params(params2, out_f, out_f)
    _check("no_proj", in_x2, out_x, params2, prepared2, 2e-3, 2e-3)

    # Case 3: projection, in_f > out_f -> sequential kernel, with forced
    # column tiling (tn=128, grid_n=2) to exercise the streamed-weight path.
    in_f3, out_f3 = 384, 256
    in_x3 = jax.random.normal(ks[5], (N, in_f3), jnp.float32)
    out_x3 = jax.random.normal(ks[6], (N, out_f3), jnp.float32)
    params3 = init_params(ks[7], in_f3, out_f3)
    prepared3 = prepare_params(params3, in_f3, out_f3, col_tile=128)
    _check("proj_seq_coltile", in_x3, out_x3, params3, prepared3, 5e-3, 5e-3)

    # Case 4: fused projection + column tiling.
    in_f4, out_f4 = 128, 256
    in_x4 = jax.random.normal(ks[8], (N, in_f4), jnp.float32)
    out_x4 = jax.random.normal(ks[9], (N, out_f4), jnp.float32)
    params4 = init_params(ks[10], in_f4, out_f4)
    prepared4 = prepare_params(params4, in_f4, out_f4, col_tile=128)
    _check("proj_fused_coltile", in_x4, out_x4, params4, prepared4, 5e-3, 5e-3)

    # Case 5: bf16 weights + activations (recommended on v6e/v7x), f32 accum.
    in_f5, out_f5 = 48, 64
    in_x5 = jax.random.normal(ks[11], (N, in_f5), jnp.float32).astype(jnp.bfloat16)
    out_x5 = jax.random.normal(ks[12], (N, out_f5), jnp.float32).astype(jnp.bfloat16)
    params5 = init_params(ks[13], in_f5, out_f5)
    prepared5 = prepare_params(params5, in_f5, out_f5, weight_dtype=jnp.bfloat16)
    _check("proj_fused_bf16", in_x5, out_x5, params5, prepared5, 4e-2, 4e-2)

    print("KERNEL_OK")
</pallas_src>

<mosaic_0001>
module attributes {stable_mosaic.version = 11 : i64} {
  func.func @_gated_skip_proj_fused_kernel(%arg0: i32, %arg1: i32, %arg2: memref<200x128xf32, #tpu.memory_space<vmem>>, %arg3: memref<200x128xf32, #tpu.memory_space<vmem>>, %arg4: memref<128x128xf32, #tpu.memory_space<vmem>>, %arg5: memref<128x128xf32, #tpu.memory_space<vmem>>, %arg6: memref<128x128xf32, #tpu.memory_space<vmem>>, %arg7: memref<1x128xf32, #tpu.memory_space<vmem>>, %arg8: memref<200x128xf32, #tpu.memory_space<vmem>>) attributes {dimension_semantics = [#tpu.dimension_semantics<parallel>, #tpu.dimension_semantics<parallel>], iteration_bounds = array<i64: 1, 1>, scalar_prefetch = 0 : i64, scratch_operands = 0 : i64, tpu.core_type = #tpu.core_type<tc>, window_params = [{transform_indices = @transform_0, window_bounds = array<i64: 200, 128>}, {transform_indices = @transform_1, window_bounds = array<i64: 200, 128>}, {transform_indices = @transform_2, window_bounds = array<i64: 128, 128>}, {transform_indices = @transform_3, window_bounds = array<i64: 128, 128>}, {transform_indices = @transform_4, window_bounds = array<i64: 128, 128>}, {transform_indices = @transform_5, window_bounds = array<i64: 1, 128>}, {transform_indices = @transform_6, window_bounds = array<i64: 200, 128>}]} {
    %c128_i32 = arith.constant 128 : i32
    %0 = arith.muli %arg1, %c128_i32 : i32
    %1 = tpu.assume_multiple %0, 128 : i32
    %c0 = arith.constant 0 : index
    %c0_0 = arith.constant 0 : index
    %2 = vector.load %arg2[%c0, %c0_0] : memref<200x128xf32, #tpu.memory_space<vmem>>, vector<200x128xf32>
    %c0_1 = arith.constant 0 : index
    %c0_2 = arith.constant 0 : index
    %3 = vector.load %arg3[%c0_1, %c0_2] : memref<200x128xf32, #tpu.memory_space<vmem>>, vector<200x128xf32>
    %c0_3 = arith.constant 0 : index
    %c0_4 = arith.constant 0 : index
    %4 = vector.load %arg4[%c0_3, %c0_4] : memref<128x128xf32, #tpu.memory_space<vmem>>, vector<128x128xf32>
    %cst = arith.constant dense<0.000000e+00> : vector<200x128xf32>
    %5 = tpu.matmul %2, %4, %cst {dimension_numbers = #tpu.dot_dimension_numbers<[1], [0], [0], [1], [0, 0, 1, 1], [], []>} : vector<200x128xf32>, vector<128x128xf32>, vector<200x128xf32> -> vector<200x128xf32>
    %c0_5 = arith.constant 0 : index
    %c0_6 = arith.constant 0 : index
    %6 = vector.load %arg5[%c0_5, %c0_6] : memref<128x128xf32, #tpu.memory_space<vmem>>, vector<128x128xf32>
    %cst_7 = arith.constant dense<0.000000e+00> : vector<200x128xf32>
    %7 = tpu.matmul %2, %6, %cst_7 {dimension_numbers = #tpu.dot_dimension_numbers<[1], [0], [0], [1], [0, 0, 1, 1], [], []>} : vector<200x128xf32>, vector<128x128xf32>, vector<200x128xf32> -> vector<200x128xf32>
    %c0_8 = arith.constant 0 : index
    %c0_9 = arith.constant 0 : index
    %8 = vector.load %arg6[%c0_8, %c0_9] : memref<128x128xf32, #tpu.memory_space<vmem>>, vector<128x128xf32>
    %cst_10 = arith.constant dense<0.000000e+00> : vector<200x128xf32>
    %9 = tpu.matmul %3, %8, %cst_10 {dimension_numbers = #tpu.dot_dimension_numbers<[1], [0], [0], [1], [0, 0, 1, 1], [], []>} : vector<200x128xf32>, vector<128x128xf32>, vector<200x128xf32> -> vector<200x128xf32>
    %10 = arith.addf %7, %9 : vector<200x128xf32>
    %c0_11 = arith.constant 0 : index
    %c0_12 = arith.constant 0 : index
    %11 = vector.load %arg7[%c0_11, %c0_12] : memref<1x128xf32, #tpu.memory_space<vmem>>, vector<1x128xf32>
    %12 = vector.broadcast %11 : vector<1x128xf32> to vector<200x128xf32>
    %13 = arith.addf %10, %12 : vector<200x128xf32>
    %14 = arith.negf %13 : vector<200x128xf32>
    %15 = math.exp %14 : vector<200x128xf32>
    %cst_13 = arith.constant 1.000000e+00 : f32
    %16 = vector.broadcast %cst_13 : f32 to vector<200x128xf32>
    %17 = arith.addf %16, %15 : vector<200x128xf32>
    %18 = arith.divf %16, %17 : vector<200x128xf32>
    %c0_14 = arith.constant 0 : index
    %19 = arith.index_cast %1 : i32 to index
    %20 = vector.load %arg3[%c0_14, %19] : memref<200x128xf32, #tpu.memory_space<vmem>>, vector<200x128xf32>
    %21 = arith.mulf %18, %20 : vector<200x128xf32>
    %cst_15 = arith.constant 1.000000e+00 : f32
    %22 = vector.broadcast %cst_15 : f32 to vector<200x128xf32>
    %23 = arith.subf %22, %18 : vector<200x128xf32>
    %24 = arith.mulf %23, %5 : vector<200x128xf32>
    %25 = arith.addf %21, %24 : vector<200x128xf32>
    %c0_16 = arith.constant 0 : index
    %c0_17 = arith.constant 0 : index
    %26 = vector.load %arg8[%c0_16, %c0_17] : memref<200x128xf32, #tpu.memory_space<vmem>>, vector<200x128xf32>
    tpu.vector_store %arg8[%c0_16, %c0_17], %25 {strides = array<i32>} : memref<200x128xf32, #tpu.memory_space<vmem>>, vector<200x128xf32>,
    return
  }
  func.func @transform_0(%arg0: i32, %arg1: i32) -> (i32, i32) {
    %c0_i32 = arith.constant 0 : i32
    %c0_i32_0 = arith.constant 0 : i32
    return %arg0, %c0_i32 : i32, i32
  }
  func.func @transform_1(%arg0: i32, %arg1: i32) -> (i32, i32) {
    %c0_i32 = arith.constant 0 : i32
    %c0_i32_0 = arith.constant 0 : i32
    return %arg0, %c0_i32 : i32, i32
  }
  func.func @transform_2(%arg0: i32, %arg1: i32) -> (i32, i32) {
    %c0_i32 = arith.constant 0 : i32
    %c0_i32_0 = arith.constant 0 : i32
    return %c0_i32, %arg1 : i32, i32
  }
  func.func @transform_3(%arg0: i32, %arg1: i32) -> (i32, i32) {
    %c0_i32 = arith.constant 0 : i32
    %c0_i32_0 = arith.constant 0 : i32
    return %c0_i32, %arg1 : i32, i32
  }
  func.func @transform_4(%arg0: i32, %arg1: i32) -> (i32, i32) {
    %c0_i32 = arith.constant 0 : i32
    %c0_i32_0 = arith.constant 0 : i32
    return %c0_i32, %arg1 : i32, i32
  }
  func.func @transform_5(%arg0: i32, %arg1: i32) -> (i32, i32) {
    %c0_i32 = arith.constant 0 : i32
    %c0_i32_0 = arith.constant 0 : i32
    return %c0_i32, %arg1 : i32, i32
  }
  func.func @transform_6(%arg0: i32, %arg1: i32) -> (i32, i32) {
    %c0_i32 = arith.constant 0 : i32
    return %arg0, %arg1 : i32, i32
  }
}

</mosaic_0001>

<bundles_post_ra>
// kernel: tpu_custom_call.1
= control target key start
LH: loop header
LB: loop body
LE: loop exit
PB: predicated region body
PF: predicated region fallthrough
CT: control target
= control target key end

     0   :  { %11 = vsyncpa [#allocation3], 0  ;;  %s2562_s0 = inlined_call_operand.hbm [shape: f32[200,128], index: 0, kind: input, shape index: {}]   ;;  %s2563_s1 = inlined_call_operand.hbm [shape: f32[200,128], index: 1, kind: input, shape index: {}]   ;;  %s2564_s2 = inlined_call_operand.hbm [shape: f32[128,128], index: 2, kind: input, shape index: {}]   ;;  %s2565_s3 = inlined_call_operand.hbm [shape: f32[128,128], index: 3, kind: input, shape index: {}]   ;;  %s2566_s4 = inlined_call_operand.hbm [shape: f32[128,128], index: 4, kind: input, shape index: {}]   ;;  %s2567_s5 = inlined_call_operand.vmem [shape: f32[1,128], index: 5, kind: input, shape index: {}]   ;;  %s2568_s6 = inlined_call_operand.hbm [shape: f32[200,128], index: 6, kind: output, shape index: {}]  }
   0x1   :  { %12 = vsyncpa [#allocation6], 0 }
   0x2   :  { %13 = vsyncpa [#allocation9], 0 }
   0x3   :  { %14 = vsyncpa [#allocation4], 0  ;;  %s1925_s21 = smov [#allocation5]   ;;  %s1926_s23 = smov [#allocation8]  }
   0x4   :  { %s32_s22 = sshll.u32 %s1925_s21, 4  ;;  %s56_s24 = sshll.u32 %s1926_s23, 4  ;;  %s33_s22 = int_to_ptr.vmem [resolvable:$true] %s32_s22  ;;  %s1971_s24 = int_to_ptr.vmem [resolvable:$true] %s56_s24 }
   0x5   :  { %s1785_s27 = scalar_lea.hbm %s2563_s1, 3200 }
   0x6   :  { %p1786_p0 = scmp.ne.s32.totalorder %s2563_s1, %s1785_s27  ;;  %p1789_p1 = scmp.lt.u32.totalorder %s1785_s27, %s2563_s1 }
   0x8   :  { %p1791_p2 = pnand %p1789_p1, %p1786_p0 }
   0xa   :  { %1794 = shalt.err (!%p1791_p2)
}
   0xb   :  { %s1795_s8 = scalar_lea.vmem %s33_s22, 3200  ;;  %p1800_p4 = scmp.lt.s32.totalorder %s33_s22, %s33_s22 }
   0xc   :  { %p1796_p3 = scmp.ne.s32.totalorder %s33_s22, %s1795_s8  ;;  %p1801_p5 = scmp.lt.s32.totalorder %s1795_s8, %s1795_s8 }
   0xe   :  { %p1802_p6 = por %p1801_p5, %p1800_p4 }
  0x10   :  { %p1803_p7 = pnand %p1802_p6, %p1796_p3 }
  0x12   :  { %1806 = shalt.err (!%p1803_p7)
}
  0x13   :  { %s1927_s9 = smov 128   ;;  %s1928_s10 = smov 8  }
  0x14   :  { %38 = dma.hbm_to_vmem [thread:$0]  %s2563_s1, 3200, %s33_s22, [#allocation6], %s1927_s9, %s1927_s9, %s1928_s10  }
  0x15   :  { %s1807_s15 = scalar_lea.hbm %s2565_s3, 2048 }
  0x16   :  { %p1808_p8 = scmp.ne.s32.totalorder %s2565_s3, %s1807_s15  ;;  %p1811_p9 = scmp.lt.u32.totalorder %s1807_s15, %s2565_s3 }
  0x18   :  { %p1813_p10 = pnand %p1811_p9, %p1808_p8 }
  0x1a   :  { %1816 = shalt.err (!%p1813_p10)
}
  0x1b   :  { %s1817_s20 = scalar_lea.vmem %s1971_s24, 2048  ;;  %p1822_p12 = scmp.lt.s32.totalorder %s1971_s24, %s1971_s24 }
  0x1c   :  { %p1818_p11 = scmp.ne.s32.totalorder %s1971_s24, %s1817_s20  ;;  %p1823_p13 = scmp.lt.s32.totalorder %s1817_s20, %s1817_s20 }
  0x1e   :  { %p1824_p0 = por %p1823_p13, %p1822_p12 }
  0x20   :  { %p1825_p1 = pnand %p1824_p0, %p1818_p11 }
  0x22   :  { %1828 = shalt.err (!%p1825_p1)
}
  0x23   :  { %62 = dma.hbm_to_vmem [thread:$0]  %s2565_s3, 2048, %s1971_s24, [#allocation9], %s1927_s9, %s1927_s9, %s1928_s10  }
  0x24   :  { %s1929_s22 = smov [#allocation2]   ;;  %s1930_s25 = smov [#allocation7]  }
  0x25   :  { %s20_s23 = sshll.u32 %s1929_s22, 4  ;;  %s44_s26 = sshll.u32 %s1930_s25, 4  ;;  %s21_s23 = int_to_ptr.vmem [resolvable:$true] %s20_s23  ;;  %s2008_s26 = int_to_ptr.vmem [resolvable:$true] %s44_s26 }
  0x26   :  { %s1829_s29 = scalar_lea.hbm %s2562_s0, 3200 }
  0x27   :  { %p1830_p2 = scmp.ne.s32.totalorder %s2562_s0, %s1829_s29  ;;  %p1833_p3 = scmp.lt.u32.totalorder %s1829_s29, %s2562_s0 }
  0x29   :  { %p1835_p4 = pnand %p1833_p3, %p1830_p2 }
  0x2b   :  { %1838 = shalt.err (!%p1835_p4)
}
  0x2c   :  { %s1839_s3 = scalar_lea.vmem %s21_s23, 3200  ;;  %p1844_p6 = scmp.lt.s32.totalorder %s21_s23, %s21_s23 }
  0x2d   :  { %p1840_p5 = scmp.ne.s32.totalorder %s21_s23, %s1839_s3  ;;  %p1845_p7 = scmp.lt.s32.totalorder %s1839_s3, %s1839_s3 }
  0x2f   :  { %p1846_p8 = por %p1845_p7, %p1844_p6 }
  0x31   :  { %p1847_p9 = pnand %p1846_p8, %p1840_p5 }
  0x33   :  { %1850 = shalt.err (!%p1847_p9)
}
  0x34   :  { %26 = dma.hbm_to_vmem [thread:$0]  %s2562_s0, 3200, %s21_s23, [#allocation3], %s1927_s9, %s1927_s9, %s1928_s10  }
  0x35   :  { %s1851_s15 = scalar_lea.hbm %s2564_s2, 2048 }
  0x36   :  { %p1852_p10 = scmp.ne.s32.totalorder %s2564_s2, %s1851_s15  ;;  %p1855_p11 = scmp.lt.u32.totalorder %s1851_s15, %s2564_s2 }
  0x38   :  { %p1857_p12 = pnand %p1855_p11, %p1852_p10 }
  0x3a   :  { %1860 = shalt.err (!%p1857_p12)
}
  0x3b   :  { %s1861_s20 = scalar_lea.vmem %s2008_s26, 2048  ;;  %p1866_p0 = scmp.lt.s32.totalorder %s2008_s26, %s2008_s26 }
  0x3c   :  { %p1862_p13 = scmp.ne.s32.totalorder %s2008_s26, %s1861_s20  ;;  %p1867_p1 = scmp.lt.s32.totalorder %s1861_s20, %s1861_s20 }
  0x3e   :  { %p1868_p2 = por %p1867_p1, %p1866_p0 }
  0x40   :  { %p1869_p3 = pnand %p1868_p2, %p1862_p13 }
  0x42   :  { %1872 = shalt.err (!%p1869_p3)
}
  0x43   :  { %50 = dma.hbm_to_vmem [thread:$0]  %s2564_s2, 2048, %s2008_s26, [#allocation6], %s1927_s9, %s1927_s9, %s1928_s10  }
  0x44   :  { %s1931_s21 = smov [#allocation10]   ;;  %s1873_s27 = scalar_lea.hbm %s2566_s4, 2048 }
  0x45   :  { %s68_s22 = sshll.u32 %s1931_s21, 4  ;;  %p1874_p4 = scmp.ne.s32.totalorder %s2566_s4, %s1873_s27  ;;  %s69_s22 = int_to_ptr.vmem [resolvable:$true] %s68_s22 }
  0x46   :  { %p1877_p5 = scmp.lt.u32.totalorder %s1873_s27, %s2566_s4 }
  0x48   :  { %p1879_p6 = pnand %p1877_p5, %p1874_p4 }
  0x4a   :  { %1882 = shalt.err (!%p1879_p6)
}
  0x4b   :  { %s1883_s8 = scalar_lea.vmem %s69_s22, 2048  ;;  %p1888_p8 = scmp.lt.s32.totalorder %s69_s22, %s69_s22 }
  0x4c   :  { %p1884_p7 = scmp.ne.s32.totalorder %s69_s22, %s1883_s8  ;;  %p1889_p9 = scmp.lt.s32.totalorder %s1883_s8, %s1883_s8 }
  0x4e   :  { %p1890_p10 = por %p1889_p9, %p1888_p8 }
  0x50   :  { %p1891_p11 = pnand %p1890_p10, %p1884_p7 }
  0x52   :  { %1894 = shalt.err (!%p1891_p11)
}
  0x53   :  { %74 = dma.hbm_to_vmem [thread:$0]  %s2566_s4, 2048, %s69_s22, [#allocation9], %s1927_s9, %s1927_s9, %s1928_s10  }
  0x54   :  { %1917 = dma.done.wait [#allocation3], 3200  }
  0x55   :  { %1918 = vsyncadd [#allocation3], 4294964096 }
  0x56   :  { %1919 = dma.done.wait [#allocation6], 5248  }
  0x57   :  { %1920 = vsyncadd [#allocation6], 4294962048 }
  0x58   :  { %1921 = dma.done.wait [#allocation9], 4096  }
  0x59   :  { %1922 = vsyncadd [#allocation9], 4294963200  ;;  %v1932_v0 = vmov 0.0|0.0   ;;  %vm1933_vm0 = vmmov 0   ;;  %v1934_v1 = vmov 0.0   ;;  %v143_v2 = vld [vmem:[#allocation7] sm:$0xff] }
  0x5a   :  { %1586 = vmatprep.subr.bf16.mxu0 %v1932_v0  ;;  %1658 = vmatprep.subr.bf16.mxu1 %v1932_v0  ;;  %v144_v3 = vld [vmem:[#allocation7 + $0x8] sm:$0xff]  ;;  %v145_v4 = vld [vmem:[#allocation7 + $0x10] sm:$0xff]  ;;  %v146_v6 = vld [vmem:[#allocation7 + $0x18] sm:$0xff] }
  0x5b   :  { %1297 = vmatprep.mubr.msk.f32.mxu0 %vm1933_vm0, %v1934_v1  ;;  %1336 = vmatprep.mubr.msk.f32.mxu1 %vm1933_vm0, %v1934_v1  ;;  %v1587_v5 = vpack.c.bf16 %v144_v3, %v143_v2  ;;  %v1590_v7 = vpack.c.bf16 %v146_v6, %v145_v4  ;;  %v147_v8 = vld [vmem:[#allocation7 + $0x20] sm:$0xff]  ;;  %v148_v9 = vld [vmem:[#allocation7 + $0x28] sm:$0xff]  ;;  %v149_v11 = vld [vmem:[#allocation7 + $0x30] sm:$0xff] }
  0x5c   :  { %v1593_v10 = vpack.c.bf16 %v148_v9, %v147_v8  ;;  %v150_v12 = vld [vmem:[#allocation7 + $0x38] sm:$0xff]  ;;  %v151_v14 = vld [vmem:[#allocation7 + $0x40] sm:$0xff]  ;;  %v152_v15 = vld [vmem:[#allocation7 + $0x48] sm:$0xff] }
  0x5d   :  { %1588 = vmatpush3.bf16.msra.mxu0 %v1587_v5  ;;  %1666 = vmatpush3.bf16.msra.mxu1 %v1587_v5  ;;  %v1596_v13 = vpack.c.bf16 %v150_v12, %v149_v11  ;;  %v1599_v16 = vpack.c.bf16 %v152_v15, %v151_v14  ;;  %v153_v17 = vld [vmem:[#allocation7 + $0x50] sm:$0xff]  ;;  %v154_v18 = vld [vmem:[#allocation7 + $0x58] sm:$0xff]  ;;  %v155_v20 = vld [vmem:[#allocation7 + $0x60] sm:$0xff] }
  0x5e   :  { %1589 = vmatprep.subr.bf16.mxu0 %v1932_v0  ;;  %1659 = vmatprep.subr.bf16.mxu1 %v1932_v0  ;;  %v1602_v19 = vpack.c.bf16 %v154_v18, %v153_v17  ;;  %v156_v21 = vld [vmem:[#allocation7 + $0x68] sm:$0xff]  ;;  %v157_v23 = vld [vmem:[#allocation7 + $0x70] sm:$0xff]  ;;  %v158_v24 = vld [vmem:[#allocation7 + $0x78] sm:$0xff] }
  0x5f   :  { %v1605_v22 = vpack.c.bf16 %v156_v21, %v155_v20  ;;  %v1608_v25 = vpack.c.bf16 %v158_v24, %v157_v23  ;;  %v349_v26 = vld [vmem:[#allocation8] sm:$0xff]  ;;  %v350_v27 = vld [vmem:[#allocation8 + $0x8] sm:$0xff]  ;;  %v2080_v30 = vld [vmem:[#allocation2] sm:$0xff] }
  0x60   :  { %v365_v28 = vld [vmem:[#allocation10] sm:$0xff]  ;;  %v366_v29 = vld [vmem:[#allocation10 + $0x8] sm:$0xff]  ;;  %v1635_v31 = vpack.c.bf16 %v350_v27, %v349_v26  ;;  %v2082_v32 = vld [vmem:[#allocation2 + $0x68] sm:$0xff] }
  0x61   :  { %1591 = vmatpush3.bf16.msra.mxu0 %v1590_v7  ;;  %1667 = vmatpush3.bf16.msra.mxu1 %v1590_v7  ;;  %v1611_v33 = vpack.c.bf16 %v366_v29, %v365_v28  ;;  %v351_v34 = vld [vmem:[#allocation8 + $0x10] sm:$0xff]  ;;  %v352_v35 = vld [vmem:[#allocation8 + $0x18] sm:$0xff]  ;;  %v2092_v39 = vld [vmem:[#allocation2 + $0x70] sm:$0xff] }
  0x62   :  { %1592 = vmatprep.subr.bf16.mxu0 %v1932_v0  ;;  %1660 = vmatprep.subr.bf16.mxu1 %v1932_v0  ;;  %v367_v36 = vld [vmem:[#allocation10 + $0x10] sm:$0xff]  ;;  %v368_v37 = vld [vmem:[#allocation10 + $0x18] sm:$0xff]  ;;  %v1638_v40 = vpack.c.bf16 %v352_v35, %v351_v34  ;;  %v353_v42 = vld [vmem:[#allocation8 + $0x20] sm:$0xff] }
  0x63   :  { %v2090_v38 = vld [vmem:[#allocation2 + $0x8] sm:$0xff]  ;;  %v1614_v41 = vpack.c.bf16 %v368_v37, %v367_v36  ;;  %v354_v43 = vld [vmem:[#allocation8 + $0x28] sm:$0xff]  ;;  %v369_v44 = vld [vmem:[#allocation10 + $0x20] sm:$0xff] }
  0x64   :  { %v370_v45 = vld [vmem:[#allocation10 + $0x28] sm:$0xff]  ;;  %v2102_v46 = vld [vmem:[#allocation2 + $0x10] sm:$0xff]  ;;  %v1641_v48 = vpack.c.bf16 %v354_v43, %v353_v42  ;;  %v355_v50 = vld [vmem:[#allocation8 + $0x30] sm:$0xff] }
  0x65   :  { %1594 = vmatpush3.bf16.msra.mxu0 %v1593_v10  ;;  %1668 = vmatpush3.bf16.msra.mxu1 %v1593_v10  ;;  %v2104_v47 = vld [vmem:[#allocation2 + $0x78] sm:$0xff]  ;;  %v1617_v49 = vpack.c.bf16 %v370_v45, %v369_v44  ;;  %v356_v51 = vld [vmem:[#allocation8 + $0x38] sm:$0xff]  ;;  %v371_v52 = vld [vmem:[#allocation10 + $0x30] sm:$0xff] }
  0x66   :  { %1595 = vmatprep.subr.bf16.mxu0 %v1932_v0  ;;  %1661 = vmatprep.subr.bf16.mxu1 %v1932_v0  ;;  %v372_v53 = vld [vmem:[#allocation10 + $0x38] sm:$0xff]  ;;  %v2114_v54 = vld [vmem:[#allocation2 + $0x18] sm:$0xff]  ;;  %v2116_v55 = vld [vmem:[#allocation2 + $0x80] sm:$0xff]  ;;  %v1644_v56 = vpack.c.bf16 %v356_v51, %v355_v50 }
  0x67   :  { %v1620_v57 = vpack.c.bf16 %v372_v53, %v371_v52  ;;  %v357_v58 = vld [vmem:[#allocation8 + $0x40] sm:$0xff]  ;;  %v358_v59 = vld [vmem:[#allocation8 + $0x48] sm:$0xff]  ;;  %v2126_v62 = vld [vmem:[#allocation2 + $0x20] sm:$0xff] }
  0x68   :  { %v373_v60 = vld [vmem:[#allocation10 + $0x40] sm:$0xff]  ;;  %v374_v61 = vld [vmem:[#allocation10 + $0x48] sm:$0xff]  ;;  %v2130_v63 = vld [vmem:[#allocation2 + $0x88] sm:$0xff]  ;;  %v1647_v2 = vpack.c.bf16 %v358_v59, %v357_v58 }
  0x69   :  { %1597 = vmatpush3.bf16.msra.mxu0 %v1596_v13  ;;  %1669 = vmatpush3.bf16.msra.mxu1 %v1596_v13  ;;  %v1623_v3 = vpack.c.bf16 %v374_v61, %v373_v60  ;;  %v359_v4 = vld [vmem:[#allocation8 + $0x50] sm:$0xff]  ;;  %v360_v5 = vld [vmem:[#allocation8 + $0x58] sm:$0xff]  ;;  %v2142_v9 = vld [vmem:[#allocation2 + $0x90] sm:$0xff] }
  0x6a   :  { %1598 = vmatprep.subr.bf16.mxu0 %v1932_v0  ;;  %1662 = vmatprep.subr.bf16.mxu1 %v1932_v0  ;;  %v375_v6 = vld [vmem:[#allocation10 + $0x50] sm:$0xff]  ;;  %v376_v7 = vld [vmem:[#allocation10 + $0x58] sm:$0xff]  ;;  %v1650_v10 = vpack.c.bf16 %v360_v5, %v359_v4  ;;  %v361_v12 = vld [vmem:[#allocation8 + $0x60] sm:$0xff] }
  0x6b   :  { %v2138_v8 = vld [vmem:[#allocation2 + $0x28] sm:$0xff]  ;;  %v1626_v11 = vpack.c.bf16 %v376_v7, %v375_v6  ;;  %v362_v13 = vld [vmem:[#allocation8 + $0x68] sm:$0xff]  ;;  %v377_v14 = vld [vmem:[#allocation10 + $0x60] sm:$0xff] }
  0x6c   :  { %v378_v15 = vld [vmem:[#allocation10 + $0x68] sm:$0xff]  ;;  %v1653_v18 = vpack.c.bf16 %v362_v13, %v361_v12  ;;  %v379_v20 = vld [vmem:[#allocation10 + $0x70] sm:$0xff]  ;;  %v380_v21 = vld [vmem:[#allocation10 + $0x78] sm:$0xff] }
  0x6d   :  { %1600 = vmatpush3.bf16.msra.mxu0 %v1599_v16  ;;  %1670 = vmatpush3.bf16.msra.mxu1 %v1599_v16  ;;  %v2150_v16 = vld [vmem:[#allocation2 + $0x30] sm:$0xff]  ;;  %v2154_v17 = vld [vmem:[#allocation2 + $0x98] sm:$0xff]  ;;  %v364_v23 = vld [vmem:[#allocation8 + $0x78] sm:$0xff]  ;;  %v1632_v26 = vpack.c.bf16 %v380_v21, %v379_v20 }
  0x6e   :  { %1601 = vmatprep.subr.bf16.mxu0 %v1932_v0  ;;  %1663 = vmatprep.subr.bf16.mxu1 %v1932_v0  ;;  %v2162_v24 = vld [vmem:[#allocation2 + $0x38] sm:$0xff]  ;;  %v2174_v28 = vld [vmem:[#allocation2 + $0x40] sm:$0xff]  ;;  %v2178_v29 = vld [vmem:[#allocation2 + $0xa8] sm:$0xff] }
  0x6f   :  { %v2198_v34 = vld [vmem:[#allocation2 + $0xb8] sm:$0xff]  ;;  %v2208_v36 = vld [vmem:[#allocation2 + $0xc0] sm:$0xff]  ;;  %v2258_v43 = vld [vmem:[#allocation5 + $0x28] sm:$0xff] }
  0x70   :  { %v2204_v35 = vld [vmem:[#allocation2 + $0x58] sm:$0xff]  ;;  %v2214_v37 = vld [vmem:[#allocation2 + $0x60] sm:$0xff]  ;;  %v2314_v51 = vld [vmem:[#allocation5 + $0x60] sm:$0xff] }
  0x71   :  { %1603 = vmatpush3.bf16.msra.mxu0 %v1602_v19  ;;  %1671 = vmatpush3.bf16.msra.mxu1 %v1602_v19  ;;  %v1629_v19 = vpack.c.bf16 %v378_v15, %v377_v14  ;;  %v2234_v42 = vld [vmem:[#allocation5 + $0x10] sm:$0xff]  ;;  %v2274_v45 = vld [vmem:[#allocation5 + $0x38] sm:$0xff]  ;;  %v2322_v52 = vld [vmem:[#allocation5 + $0x68] sm:$0xff] }
  0x72   :  { %1604 = vmatprep.subr.bf16.mxu0 %v1932_v0  ;;  %1664 = vmatprep.subr.bf16.mxu1 %v1932_v0  ;;  %v2266_v44 = vld [vmem:[#allocation5 + $0x30] sm:$0xff]  ;;  %v2306_v50 = vld [vmem:[#allocation5 + $0x58] sm:$0xff]  ;;  %v2410_v60 = vld [vmem:[#allocation5 + $0xc0] sm:$0xff] }
  0x73   :  { %v2330_v53 = vld [vmem:[#allocation5 + $0x70] sm:$0xff]  ;;  %v2402_v59 = vld [vmem:[#allocation5 + $0xb8] sm:$0xff]  ;;  %2576 = vst [vmem:[#allocation19_spill] sm:$0xff] %v2410_v60 }
  0x74   :  { %v2394_v58 = vld [vmem:[#allocation5 + $0xb0] sm:$0xff]  ;;  %2575 = vst [vmem:[#allocation18_spill] sm:$0xff] %v2402_v59 }
  0x75   :  { %1606 = vmatpush3.bf16.msra.mxu0 %v1605_v22  ;;  %1672 = vmatpush3.bf16.msra.mxu1 %v1605_v22  ;;  %v363_v22 = vld [vmem:[#allocation8 + $0x70] sm:$0xff]  ;;  %2574 = vst [vmem:[#allocation17_spill] sm:$0xff] %v2394_v58 }
  0x76   :  { %1607 = vmatprep.subr.bf16.mxu0 %v1932_v0  ;;  %1665 = vmatprep.subr.bf16.mxu1 %v1932_v0  ;;  %v1656_v27 = vpack.c.bf16 %v364_v23, %v363_v22 }
  0x79   :  { %1609 = vmatpush3.bf16.msra.mxu0 %v1608_v25  ;;  %1673 = vmatpush3.bf16.msra.mxu1 %v1608_v25  ;;  %v2166_v25 = vld [vmem:[#allocation2 + $0xa0] sm:$0xff] }
  0x7a   :  { %1634 = vmatprep.subr.bf16.mxu0 %v1932_v0  ;;  %1610 = vmatprep.subr.bf16.mxu1 %v1932_v0 }
  0x7c   :  { %1298 = vmatmul.mubr.f32.vlgmr.msra.gmra.mrb[0].mxu0 %v2080_v30  ;;  %1337 = vmatmul.mubr.f32.vlgmr.msra.gmra.mrb[0].mxu1 %v2082_v32 }
  0x7d   :  { %1636 = vmatpush3.bf16.msra.mxu0 %v1635_v31  ;;  %1300 = vmatprep.mubr.msk.f32.mxu0 %vm1933_vm0, %v1934_v1  ;;  %v2188_v31 = vld [vmem:[#allocation2 + $0xb0] sm:$0xff] }
  0x7e   :  { %1612 = vmatpush3.bf16.msra.mxu1 %v1611_v33  ;;  %1339 = vmatprep.mubr.msk.f32.mxu1 %vm1933_vm0, %v1934_v1  ;;  %v2194_v33 = vld [vmem:[#allocation2 + $0x50] sm:$0xff] }
  0x7f   :  { %1637 = vmatprep.subr.bf16.mxu0 %v1932_v0  ;;  %1613 = vmatprep.subr.bf16.mxu1 %v1932_v0 }
  0x80   :  { %1301 = vmatmul.mubr.f32.gmra.mrb[2].mxu0 %v2090_v38  ;;  %1340 = vmatmul.mubr.f32.gmra.mrb[2].mxu1 %v2092_v39 }
  0x81   :  { %1303 = vmatprep.mubr.msk.f32.mxu0 %vm1933_vm0, %v1934_v1  ;;  %1639 = vmatpush3.bf16.msra.mxu0 %v1638_v40  ;;  %v2218_v40 = vld [vmem:[#allocation5] sm:$0xff] }
  0x82   :  { %1342 = vmatprep.mubr.msk.f32.mxu1 %vm1933_vm0, %v1934_v1  ;;  %1615 = vmatpush3.bf16.msra.mxu1 %v1614_v41  ;;  %v2226_v41 = vld [vmem:[#allocation5 + $0x8] sm:$0xff] }
  0x83   :  { %1640 = vmatprep.subr.bf16.mxu0 %v1932_v0  ;;  %1616 = vmatprep.subr.bf16.mxu1 %v1932_v0 }
  0x84   :  { %1304 = vmatmul.mubr.f32.gmra.mrb[4].mxu0 %v2102_v46  ;;  %1343 = vmatmul.mubr.f32.gmra.mrb[4].mxu1 %v2104_v47 }
  0x85   :  { %1306 = vmatprep.mubr.msk.f32.mxu0 %vm1933_vm0, %v1934_v1  ;;  %1642 = vmatpush3.bf16.msra.mxu0 %v1641_v48  ;;  %v2290_v48 = vld [vmem:[#allocation5 + $0x48] sm:$0xff] }
  0x86   :  { %1345 = vmatprep.mubr.msk.f32.mxu1 %vm1933_vm0, %v1934_v1  ;;  %1618 = vmatpush3.bf16.msra.mxu1 %v1617_v49  ;;  %v2298_v49 = vld [vmem:[#allocation5 + $0x50] sm:$0xff] }
  0x87   :  { %1643 = vmatprep.subr.bf16.mxu0 %v1932_v0  ;;  %1619 = vmatprep.subr.bf16.mxu1 %v1932_v0 }
  0x88   :  { %1307 = vmatmul.mubr.f32.gmra.mrb[6].mxu0 %v2114_v54  ;;  %1346 = vmatmul.mubr.f32.gmra.mrb[6].mxu1 %v2116_v55 }
  0x89   :  { %1309 = vmatprep.mubr.msk.f32.mxu0 %vm1933_vm0, %v1934_v1  ;;  %1348 = vmatprep.mubr.msk.f32.mxu1 %vm1933_vm0, %v1934_v1 }
  0x8a   :  { %1645 = vmatpush3.bf16.msra.mxu0 %v1644_v56  ;;  %1621 = vmatpush3.bf16.msra.mxu1 %v1620_v57  ;;  %v2378_v56 = vld [vmem:[#allocation5 + $0xa0] sm:$0xff]  ;;  %v2386_v57 = vld [vmem:[#allocation5 + $0xa8] sm:$0xff] }
  0x8b   :  { %1646 = vmatprep.subr.bf16.mxu0 %v1932_v0  ;;  %1622 = vmatprep.subr.bf16.mxu1 %v1932_v0  ;;  %2573 = vst [vmem:[#allocation16_spill] sm:$0xff] %v2386_v57 }
  0x8c   :  { %1310 = vmatmul.mubr.f32.gmra.mrb[8].mxu0 %v2126_v62  ;;  %1349 = vmatmul.mubr.f32.gmra.mrb[8].mxu1 %v2130_v63 }
  0x8d   :  { %1312 = vmatprep.mubr.msk.f32.mxu0 %vm1933_vm0, %v1934_v1  ;;  %1351 = vmatprep.mubr.msk.f32.mxu1 %vm1933_vm0, %v1934_v1 }
  0x8e   :  { %1648 = vmatpush3.bf16.msra.mxu0 %v1647_v2  ;;  %1624 = vmatpush3.bf16.msra.mxu1 %v1623_v3 }
  0x8f   :  { %1649 = vmatprep.subr.bf16.mxu0 %v1932_v0  ;;  %1625 = vmatprep.subr.bf16.mxu1 %v1932_v0 }
  0x90   :  { %1313 = vmatmul.mubr.f32.gmra.mrb[10].mxu0 %v2138_v8  ;;  %1352 = vmatmul.mubr.f32.gmra.mrb[10].mxu1 %v2142_v9 }
  0x91   :  { %1315 = vmatprep.mubr.msk.f32.mxu0 %vm1933_vm0, %v1934_v1  ;;  %1354 = vmatprep.mubr.msk.f32.mxu1 %vm1933_vm0, %v1934_v1 }
  0x92   :  { %1651 = vmatpush3.bf16.msra.mxu0 %v1650_v10  ;;  %1627 = vmatpush3.bf16.msra.mxu1 %v1626_v11 }
  0x93   :  { %1652 = vmatprep.subr.bf16.mxu0 %v1932_v0  ;;  %1628 = vmatprep.subr.bf16.mxu1 %v1932_v0 }
  0x94   :  { %1316 = vmatmul.mubr.f32.gmra.mrb[12].mxu0 %v2150_v16  ;;  %1355 = vmatmul.mubr.f32.gmra.mrb[12].mxu1 %v2154_v17 }
  0x95   :  { %1318 = vmatprep.mubr.msk.f32.mxu0 %vm1933_vm0, %v1934_v1  ;;  %1357 = vmatprep.mubr.msk.f32.mxu1 %vm1933_vm0, %v1934_v1 }
  0x96   :  { %1654 = vmatpush3.bf16.msra.mxu0 %v1653_v18  ;;  %1630 = vmatpush3.bf16.msra.mxu1 %v1629_v19 }
  0x97   :  { %1631 = vmatprep.subr.bf16.mxu1 %v1932_v0  ;;  %1655 = vmatprep.subr.bf16.mxu0 %v1932_v0  ;;  %v2184_v0 = vld [vmem:[#allocation2 + $0x48] sm:$0xff] }
  0x98   :  { %1319 = vmatmul.mubr.f32.gmra.mrb[14].mxu0 %v2162_v24  ;;  %1358 = vmatmul.mubr.f32.gmra.mrb[14].mxu1 %v2166_v25 }
  0x99   :  { %1321 = vmatprep.mubr.msk.f32.mxu0 %vm1933_vm0, %v1934_v1  ;;  %1360 = vmatprep.mubr.msk.f32.mxu1 %vm1933_vm0, %v1934_v1 }
  0x9a   :  { %1633 = vmatpush3.bf16.msra.mxu1 %v1632_v26  ;;  %1657 = vmatpush3.bf16.msra.mxu0 %v1656_v27 }
  0x9c   :  { %1322 = vmatmul.mubr.f32.gmra.mrb[16].mxu0 %v2174_v28  ;;  %1361 = vmatmul.mubr.f32.gmra.mrb[16].mxu1 %v2178_v29 }
  0x9d   :  { %1324 = vmatprep.mubr.msk.f32.mxu0 %vm1933_vm0, %v1934_v1  ;;  %1363 = vmatprep.mubr.msk.f32.mxu1 %vm1933_vm0, %v1934_v1 }
  0xa0   :  { %1325 = vmatmul.mubr.f32.gmra.mrb[18].mxu0 %v2184_v0  ;;  %1364 = vmatmul.mubr.f32.gmra.mrb[18].mxu1 %v2188_v31 }
  0xa1   :  { %1327 = vmatprep.mubr.msk.f32.mxu0 %vm1933_vm0, %v1934_v1  ;;  %1366 = vmatprep.mubr.msk.f32.mxu1 %vm1933_vm0, %v1934_v1 }
  0xa4   :  { %1328 = vmatmul.mubr.f32.gmra.mrb[20].mxu0 %v2194_v33  ;;  %1367 = vmatmul.mubr.f32.gmra.mrb[20].mxu1 %v2198_v34 }
  0xa5   :  { %1330 = vmatprep.mubr.msk.f32.mxu0 %vm1933_vm0, %v1934_v1  ;;  %1369 = vmatprep.mubr.msk.f32.mxu1 %vm1933_vm0, %v1934_v1 }
  0xa8   :  { %1331 = vmatmul.mubr.f32.gmra.mrb[22].mxu0 %v2204_v35  ;;  %1370 = vmatmul.mubr.f32.gmra.mrb[22].mxu1 %v2208_v36 }
  0xa9   :  { %1333 = vmatprep.mubr.msk.f32.mxu0 %vm1933_vm0, %v1934_v1  ;;  %1404 = vmatprep.mubr.msk.f32.mxu1 %vm1933_vm0, %v1934_v1 }
  0xac   :  { %1334 = vmatmul.mubr.f32.gmra.mrb[24].mxu0 %v2214_v37  ;;  %1405 = vmatmul.mubr.f32.vlgmr.msra.gmra.mrb[24].mxu1 %v2218_v40 }
  0xad   :  { %1511 = vmatprep.mubr.msk.f32.mxu0 %vm1933_vm0, %v1934_v1  ;;  %1407 = vmatprep.mubr.msk.f32.mxu1 %vm1933_vm0, %v1934_v1 }
  0xb0   :  { %1512 = vmatmul.mubr.f32.vlgmr.msra.gmra.mrb[26].mxu0 %v2080_v30  ;;  %1408 = vmatmul.mubr.f32.gmra.mrb[26].mxu1 %v2226_v41  ;;  %v2242_v30 = vld [vmem:[#allocation5 + $0x18] sm:$0xff] }
  0xb1   :  { %1514 = vmatprep.mubr.msk.f32.mxu0 %vm1933_vm0, %v1934_v1  ;;  %1410 = vmatprep.mubr.msk.f32.mxu1 %vm1933_vm0, %v1934_v1 }
  0xb4   :  { %1515 = vmatmul.mubr.f32.gmra.mrb[28].mxu0 %v2090_v38  ;;  %1411 = vmatmul.mubr.f32.gmra.mrb[28].mxu1 %v2234_v42  ;;  %v2250_v38 = vld [vmem:[#allocation5 + $0x20] sm:$0xff] }
  0xb5   :  { %1517 = vmatprep.mubr.msk.f32.mxu0 %vm1933_vm0, %v1934_v1  ;;  %1413 = vmatprep.mubr.msk.f32.mxu1 %vm1933_vm0, %v1934_v1 }
  0xb8   :  { %1518 = vmatmul.mubr.f32.gmra.mrb[30].mxu0 %v2102_v46  ;;  %1414 = vmatmul.mubr.f32.gmra.mrb[30].mxu1 %v2242_v30  ;;  %v2282_v46 = vld [vmem:[#allocation5 + $0x40] sm:$0xff] }
  0xb9   :  { %1520 = vmatprep.mubr.msk.f32.mxu0 %vm1933_vm0, %v1934_v1  ;;  %1416 = vmatprep.mubr.msk.f32.mxu1 %vm1933_vm0, %v1934_v1 }
  0xbc   :  { %1521 = vmatmul.mubr.f32.gmra.mrb[32].mxu0 %v2114_v54  ;;  %1417 = vmatmul.mubr.f32.gmra.mrb[32].mxu1 %v2250_v38  ;;  %v2338_v54 = vld [vmem:[#allocation5 + $0x78] sm:$0xff] }
  0xbd   :  { %1523 = vmatprep.mubr.msk.f32.mxu0 %vm1933_vm0, %v1934_v1  ;;  %1419 = vmatprep.mubr.msk.f32.mxu1 %vm1933_vm0, %v1934_v1 }
  0xc0   :  { %1524 = vmatmul.mubr.f32.gmra.mrb[34].mxu0 %v2126_v62  ;;  %1420 = vmatmul.mubr.f32.gmra.mrb[34].mxu1 %v2258_v43 }
  0xc1   :  { %1526 = vmatprep.mubr.msk.f32.mxu0 %vm1933_vm0, %v1934_v1  ;;  %1422 = vmatprep.mubr.msk.f32.mxu1 %vm1933_vm0, %v1934_v1 }
  0xc4   :  { %1527 = vmatmul.mubr.f32.gmra.mrb[36].mxu0 %v2138_v8  ;;  %1423 = vmatmul.mubr.f32.gmra.mrb[36].mxu1 %v2266_v44 }
  0xc5   :  { %1529 = vmatprep.mubr.msk.f32.mxu0 %vm1933_vm0, %v1934_v1  ;;  %1425 = vmatprep.mubr.msk.f32.mxu1 %vm1933_vm0, %v1934_v1 }
  0xc8   :  { %1530 = vmatmul.mubr.f32.gmra.mrb[38].mxu0 %v2150_v16  ;;  %1426 = vmatmul.mubr.f32.gmra.mrb[38].mxu1 %v2274_v45 }
  0xc9   :  { %1532 = vmatprep.mubr.msk.f32.mxu0 %vm1933_vm0, %v1934_v1  ;;  %1428 = vmatprep.mubr.msk.f32.mxu1 %vm1933_vm0, %v1934_v1 }
  0xcc   :  { %1533 = vmatmul.mubr.f32.gmra.mrb[40].mxu0 %v2162_v24  ;;  %1429 = vmatmul.mubr.f32.gmra.mrb[40].mxu1 %v2282_v46 }
  0xcd   :  { %1535 = vmatprep.mubr.msk.f32.mxu0 %vm1933_vm0, %v1934_v1  ;;  %1431 = vmatprep.mubr.msk.f32.mxu1 %vm1933_vm0, %v1934_v1 }
  0xd0   :  { %1536 = vmatmul.mubr.f32.gmra.mrb[42].mxu0 %v2174_v28  ;;  %1432 = vmatmul.mubr.f32.gmra.mrb[42].mxu1 %v2290_v48 }
  0xd1   :  { %1538 = vmatprep.mubr.msk.f32.mxu0 %vm1933_vm0, %v1934_v1  ;;  %1434 = vmatprep.mubr.msk.f32.mxu1 %vm1933_vm0, %v1934_v1 }
  0xd4   :  { %1539 = vmatmul.mubr.f32.gmra.mrb[44].mxu0 %v2184_v0  ;;  %1435 = vmatmul.mubr.f32.gmra.mrb[44].mxu1 %v2298_v49 }
  0xd5   :  { %1541 = vmatprep.mubr.msk.f32.mxu0 %vm1933_vm0, %v1934_v1  ;;  %1437 = vmatprep.mubr.msk.f32.mxu1 %vm1933_vm0, %v1934_v1 }
  0xd8   :  { %1542 = vmatmul.mubr.f32.gmra.mrb[46].mxu0 %v2194_v33  ;;  %1438 = vmatmul.mubr.f32.gmra.mrb[46].mxu1 %v2306_v50 }
  0xd9   :  { %1544 = vmatprep.mubr.msk.f32.mxu0 %vm1933_vm0, %v1934_v1  ;;  %1440 = vmatprep.mubr.msk.f32.mxu1 %vm1933_vm0, %v1934_v1 }
  0xdc   :  { %1545 = vmatmul.mubr.f32.gmra.mrb[48].mxu0 %v2204_v35  ;;  %1441 = vmatmul.mubr.f32.gmra.mrb[48].mxu1 %v2314_v51 }
  0xdd   :  { %1547 = vmatprep.mubr.msk.f32.mxu0 %vm1933_vm0, %v1934_v1  ;;  %1443 = vmatprep.mubr.msk.f32.mxu1 %vm1933_vm0, %v1934_v1 }
  0xe0   :  { %1548 = vmatmul.mubr.f32.gmra.mrb[50].mxu0 %v2214_v37  ;;  %1444 = vmatmul.mubr.f32.gmra.mrb[50].mxu1 %v2322_v52 }
  0xe1   :  { %1550 = vmatprep.mubr.msk.f32.mxu0 %vm1933_vm0, %v1934_v1  ;;  %1446 = vmatprep.mubr.msk.f32.mxu1 %vm1933_vm0, %v1934_v1 }
  0xe4   :  { %1551 = vmatmul.mubr.f32.gmra.mrb[52].mxu0 %v2082_v32  ;;  %1447 = vmatmul.mubr.f32.gmra.mrb[52].mxu1 %v2330_v53  ;;  %v2346_v32 = vld [vmem:[#allocation5 + $0x80] sm:$0xff] }
  0xe5   :  { %1553 = vmatprep.mubr.msk.f32.mxu0 %vm1933_vm0, %v1934_v1  ;;  %1449 = vmatprep.mubr.msk.f32.mxu1 %vm1933_vm0, %v1934_v1 }
  0xe8   :  { %1554 = vmatmul.mubr.f32.gmra.mrb[54].mxu0 %v2092_v39  ;;  %1450 = vmatmul.mubr.f32.gmra.mrb[54].mxu1 %v2338_v54  ;;  %v2354_v39 = vld [vmem:[#allocation5 + $0x88] sm:$0xff] }
  0xe9   :  { %1556 = vmatprep.mubr.msk.f32.mxu0 %vm1933_vm0, %v1934_v1  ;;  %1452 = vmatprep.mubr.msk.f32.mxu1 %vm1933_vm0, %v1934_v1 }
  0xec   :  { %1557 = vmatmul.mubr.f32.gmra.mrb[56].mxu0 %v2104_v47  ;;  %1453 = vmatmul.mubr.f32.gmra.mrb[56].mxu1 %v2346_v32  ;;  %v2362_v47 = vld [vmem:[#allocation5 + $0x90] sm:$0xff] }
  0xed   :  { %1559 = vmatprep.mubr.msk.f32.mxu0 %vm1933_vm0, %v1934_v1  ;;  %1455 = vmatprep.mubr.msk.f32.mxu1 %vm1933_vm0, %v1934_v1 }
  0xf0   :  { %1560 = vmatmul.mubr.f32.gmra.mrb[58].mxu0 %v2116_v55  ;;  %1456 = vmatmul.mubr.f32.gmra.mrb[58].mxu1 %v2354_v39  ;;  %v2370_v55 = vld [vmem:[#allocation5 + $0x98] sm:$0xff] }
  0xf1   :  { %1562 = vmatprep.mubr.msk.f32.mxu0 %vm1933_vm0, %v1934_v1  ;;  %1458 = vmatprep.mubr.msk.f32.mxu1 %vm1933_vm0, %v1934_v1 }
  0xf4   :  { %1563 = vmatmul.mubr.f32.gmra.mrb[60].mxu0 %v2130_v63  ;;  %1459 = vmatmul.mubr.f32.gmra.mrb[60].mxu1 %v2362_v47 }
  0xf5   :  { %1565 = vmatprep.mubr.msk.f32.mxu0 %vm1933_vm0, %v1934_v1  ;;  %1461 = vmatprep.mubr.msk.f32.mxu1 %vm1933_vm0, %v1934_v1 }
  0xf8   :  { %1566 = vmatmul.mubr.f32.gmra.mrb[62].mxu0 %v2142_v9  ;;  %1462 = vmatmul.mubr.f32.gmra.mrb[62].mxu1 %v2370_v55 }
  0xf9   :  { %1568 = vmatprep.mubr.msk.f32.mxu0 %vm1933_vm0, %v1934_v1  ;;  %1464 = vmatprep.mubr.msk.f32.mxu1 %vm1933_vm0, %v1934_v1 }
  0xfc   :  { %1569 = vmatmul.mubr.f32.gmra.mrb[64].mxu0 %v2154_v17  ;;  %1465 = vmatmul.mubr.f32.gmra.mrb[64].mxu1 %v2378_v56 }
  0xfd   :  { %1571 = vmatprep.mubr.msk.f32.mxu0 %vm1933_vm0, %v1934_v1  ;;  %1467 = vmatprep.mubr.msk.f32.mxu1 %vm1933_vm0, %v1934_v1 }
 0x100   :  { %1572 = vmatmul.mubr.f32.gmra.mrb[66].mxu0 %v2166_v25  ;;  %1468 = vmatmul.mubr.f32.gmra.mrb[66].mxu1 %v2386_v57 }
 0x101   :  { %1574 = vmatprep.mubr.msk.f32.mxu0 %vm1933_vm0, %v1934_v1  ;;  %1470 = vmatprep.mubr.msk.f32.mxu1 %vm1933_vm0, %v1934_v1 }
 0x104   :  { %1575 = vmatmul.mubr.f32.gmra.mrb[68].mxu0 %v2178_v29  ;;  %1471 = vmatmul.mubr.f32.gmra.mrb[68].mxu1 %v2394_v58 }
 0x105   :  { %1577 = vmatprep.mubr.msk.f32.mxu0 %vm1933_vm0, %v1934_v1  ;;  %1473 = vmatprep.mubr.msk.f32.mxu1 %vm1933_vm0, %v1934_v1 }
 0x108   :  { %1578 = vmatmul.mubr.f32.gmra.mrb[70].mxu0 %v2188_v31  ;;  %1474 = vmatmul.mubr.f32.gmra.mrb[70].mxu1 %v2402_v59 }
 0x109   :  { %1580 = vmatprep.mubr.msk.f32.mxu0 %vm1933_vm0, %v1934_v1  ;;  %1476 = vmatprep.mubr.msk.f32.mxu1 %vm1933_vm0, %v1934_v1 }
 0x10c   :  { %1581 = vmatmul.mubr.f32.gmra.mrb[72].mxu0 %v2198_v34  ;;  %1477 = vmatmul.mubr.f32.gmra.mrb[72].mxu1 %v2410_v60 }
 0x10d   :  { %1583 = vmatprep.mubr.msk.f32.mxu0 %vm1933_vm0, %v1934_v1 }
 0x110   :  { %1584 = vmatmul.mubr.f32.gmra.mrb[74].mxu0 %v2208_v36 }
 0x14f   :  { %v2417_v61 = vpop.f32.mrb[0].mxu0  ;;  %v2419_v62 = vpop.f32.mrb[0].mxu1 }
 0x150   :  { %v1299_v63 = vpop.f32.mrb[1].mxu0  ;;  %v1338_v2 = vpop.f32.mrb[1].mxu1 }
 0x153   :  { %v2421_v3 = vpop.f32.mrb[2].mxu0  ;;  %v2423_v4 = vpop.f32.mrb[2].mxu1 }
 0x154   :  { %v1302_v5 = vpop.f32.mrb[3].mxu0  ;;  %v1341_v6 = vpop.f32.mrb[3].mxu1 }
 0x157   :  { %v2425_v7 = vpop.f32.mrb[4].mxu0  ;;  %v2427_v8 = vpop.f32.mrb[4].mxu1 }
 0x158   :  { %v1305_v9 = vpop.f32.mrb[5].mxu0  ;;  %v1344_v1 = vpop.f32.mrb[5].mxu1 }
 0x15b   :  { %v2429_v10 = vpop.f32.mrb[6].mxu0  ;;  %v2431_v11 = vpop.f32.mrb[6].mxu1 }
 0x15c   :  { %v1308_v12 = vpop.f32.mrb[7].mxu0  ;;  %v1347_v13 = vpop.f32.mrb[7].mxu1 }
 0x15f   :  { %v2433_v14 = vpop.f32.mrb[8].mxu0  ;;  %v2435_v15 = vpop.f32.mrb[8].mxu1 }
 0x160   :  { %v1311_v16 = vpop.f32.mrb[9].mxu0  ;;  %v1350_v17 = vpop.f32.mrb[9].mxu1 }
 0x163   :  { %v2437_v18 = vpop.f32.mrb[10].mxu0  ;;  %v2439_v19 = vpop.f32.mrb[10].mxu1 }
 0x164   :  { %v1314_v20 = vpop.f32.mrb[11].mxu0  ;;  %v1353_v21 = vpop.f32.mrb[11].mxu1 }
 0x167   :  { %v2441_v22 = vpop.f32.mrb[12].mxu0  ;;  %v2443_v23 = vpop.f32.mrb[12].mxu1 }
 0x168   :  { %v1317_v24 = vpop.f32.mrb[13].mxu0  ;;  %v1356_v25 = vpop.f32.mrb[13].mxu1 }
 0x16b   :  { %v2445_v26 = vpop.f32.mrb[14].mxu0  ;;  %v2447_v27 = vpop.f32.mrb[14].mxu1 }
 0x16c   :  { %v1320_v28 = vpop.f32.mrb[15].mxu0  ;;  %v1359_v29 = vpop.f32.mrb[15].mxu1 }
 0x16d   :  { %v2470_v28 = vld [vmem:[%s2567_s5] ss:$0 sm:$0xff]  ;;  %s1935_s5 = smov [#allocation11]  }
 0x16e   :  { %s1101_s3 = sshll.u32 %s1935_s5, 4  ;;  %s1102_s3 = int_to_ptr.vmem [resolvable:$true] %s1101_s3 }
 0x16f   :  { %v2449_v0 = vpop.f32.mrb[16].mxu0  ;;  %v2451_v31 = vpop.f32.mrb[16].mxu1  ;;  %s1895_s24 = scalar_lea.vmem %s1102_s3, 3200  ;;  %p1900_p13 = scmp.lt.s32.totalorder %s1102_s3, %s1102_s3 }
 0x170   :  { %2577 = vst [vmem:[#allocation20_spill] sm:$0xff] %v2451_v31  ;;  %v1323_v33 = vpop.f32.mrb[17].mxu0  ;;  %v1362_v34 = vpop.f32.mrb[17].mxu1  ;;  %p1896_p12 = scmp.ne.s32.totalorder %s1102_s3, %s1895_s24  ;;  %p1901_p0 = scmp.lt.s32.totalorder %s1895_s24, %s1895_s24 }
 0x172   :  { %p1902_p1 = por %p1901_p0, %p1900_p13 }
 0x173   :  { %v2453_v35 = vpop.f32.mrb[18].mxu0  ;;  %v2455_v36 = vpop.f32.mrb[18].mxu1 }
 0x174   :  { %2578 = vst [vmem:[#allocation21_spill] sm:$0xff] %v2455_v36  ;;  %v1326_v37 = vpop.f32.mrb[19].mxu0  ;;  %v1365_v63 = vpop.f32.mrb[19].mxu1  ;;  %p1903_p2 = pnand %p1902_p1, %p1896_p12 }
 0x177   :  { %v2457_v2 = vpop.f32.mrb[20].mxu0  ;;  %v2459_v5 = vpop.f32.mrb[20].mxu1 }
 0x178   :  { %2579 = vst [vmem:[#allocation22_spill] sm:$0xff] %v2459_v5  ;;  %v1329_v6 = vpop.f32.mrb[21].mxu0  ;;  %v1368_v9 = vpop.f32.mrb[21].mxu1 }
 0x17b   :  { %v2461_v1 = vpop.f32.mrb[22].mxu0  ;;  %v2463_v12 = vpop.f32.mrb[22].mxu1 }
 0x17c   :  { %2580 = vst [vmem:[#allocation23_spill] sm:$0xff] %v2463_v12  ;;  %v1332_v13 = vpop.f32.mrb[23].mxu0  ;;  %v1371_v16 = vpop.f32.mrb[23].mxu1 }
 0x17f   :  { %v2465_v17 = vpop.f32.mrb[24].mxu0  ;;  %v447_v20 = vpop.f32.mrb[24].mxu1 }
 0x180   :  { %v1335_v21 = vpop.f32.mrb[25].mxu0  ;;  %v1406_v24 = vpop.f32.mrb[25].mxu1 }
 0x183   :  { %v637_v25 = vpop.f32.mrb[26].mxu0  ;;  %v452_v29 = vpop.f32.mrb[26].mxu1 }
 0x184   :  { %v638_v33 = vadd.f32 %v637_v25, %v447_v20  ;;  %v1513_v34 = vpop.f32.mrb[27].mxu0  ;;  %v1409_v37 = vpop.f32.mrb[27].mxu1 }
 0x186   :  { %v768_v63 = vadd.f32 %v2470_v28, %v638_v33 }
 0x187   :  { %v642_v6 = vpop.f32.mrb[28].mxu0  ;;  %v457_v9 = vpop.f32.mrb[28].mxu1 }
 0x188   :  { %v1117_v13 = vmul.f32 -1.442695, %v768_v63  ;;  %v643_v16 = vadd.f32 %v642_v6, %v452_v29  ;;  %v1516_v12 = vpop.f32.mrb[29].mxu0  ;;  %v1412_v60 = vpop.f32.mrb[29].mxu1 }
 0x18a   :  { %1685 = vpow2.f32 %v1117_v13  ;;  %v769_v21 = vadd.f32 %v2470_v28, %v643_v16 }
 0x18b   :  { %v647_v24 = vpop.f32.mrb[30].mxu0  ;;  %v462_v5 = vpop.f32.mrb[30].mxu1 }
 0x18c   :  { %v1118_v59 = vmul.f32 -1.442695, %v769_v21  ;;  %v648_v36 = vadd.f32 %v647_v24, %v457_v9  ;;  %v1519_v58 = vpop.f32.mrb[31].mxu0  ;;  %v1415_v31 = vpop.f32.mrb[31].mxu1 }
 0x18e   :  { %1687 = vpow2.f32 %v1118_v59  ;;  %v770_v20 = vadd.f32 %v2470_v28, %v648_v36 }
 0x18f   :  { %v652_v25 = vpop.f32.mrb[32].mxu0  ;;  %v467_v33 = vpop.f32.mrb[32].mxu1 }
 0x190   :  { %v1119_v34 = vmul.f32 -1.442695, %v770_v20  ;;  %v653_v37 = vadd.f32 %v652_v25, %v462_v5  ;;  %v1522_v63 = vpop.f32.mrb[33].mxu0  ;;  %v1418_v29 = vpop.f32.mrb[33].mxu1 }
 0x192   :  { %1689 = vpow2.f32 %v1119_v34  ;;  %v771_v60 = vadd.f32 %v2470_v28, %v653_v37 }
 0x193   :  { %v657_v12 = vpop.f32.mrb[34].mxu0  ;;  %v472_v6 = vpop.f32.mrb[34].mxu1 }
 0x194   :  { %v1686_v13 = vpop.eup %1685  ;;  %v1120_v16 = vmul.f32 -1.442695, %v771_v60  ;;  %v658_v21 = vadd.f32 %v657_v12, %v467_v33  ;;  %v1525_v9 = vpop.f32.mrb[35].mxu0 }
 0x195   :  { %v1421_v58 = vpop.f32.mrb[35].mxu1  ;;  %v868_v31 = vadd.f32 1.0, %v1686_v13 }
 0x196   :  { %1691 = vpow2.f32 %v1120_v16  ;;  %v772_v59 = vadd.f32 %v2470_v28, %v658_v21 }
 0x197   :  { %1693 = vrcp.f32 %v868_v31  ;;  %v662_v36 = vpop.f32.mrb[36].mxu0  ;;  %v477_v24 = vpop.f32.mrb[36].mxu1 }
 0x198   :  { %v1688_v5 = vpop.eup %1687  ;;  %v1121_v20 = vmul.f32 -1.442695, %v772_v59  ;;  %v663_v25 = vadd.f32 %v662_v36, %v472_v6  ;;  %v1528_v34 = vpop.f32.mrb[37].mxu0 }
 0x199   :  { %v1424_v63 = vpop.f32.mrb[37].mxu1  ;;  %v869_v37 = vadd.f32 1.0, %v1688_v5 }
 0x19a   :  { %1695 = vpow2.f32 %v1121_v20  ;;  %v773_v29 = vadd.f32 %v2470_v28, %v663_v25 }
 0x19b   :  { %1697 = vrcp.f32 %v869_v37  ;;  %v667_v33 = vpop.f32.mrb[38].mxu0  ;;  %v482_v60 = vpop.f32.mrb[38].mxu1 }
 0x19c   :  { %v1690_v12 = vpop.eup %1689  ;;  %v1122_v13 = vmul.f32 -1.442695, %v773_v29  ;;  %v668_v16 = vadd.f32 %v667_v33, %v477_v24  ;;  %v1531_v9 = vpop.f32.mrb[39].mxu0 }
 0x19d   :  { %v1427_v21 = vpop.f32.mrb[39].mxu1  ;;  %v870_v58 = vadd.f32 1.0, %v1690_v12 }
 0x19e   :  { %1699 = vpow2.f32 %v1122_v13  ;;  %v774_v31 = vadd.f32 %v2470_v28, %v668_v16 }
 0x19f   :  { %1701 = vrcp.f32 %v870_v58  ;;  %v672_v6 = vpop.f32.mrb[40].mxu0  ;;  %v487_v59 = vpop.f32.mrb[40].mxu1 }
 0x1a0   :  { %v1692_v36 = vpop.eup %1691  ;;  %v1123_v5 = vmul.f32 -1.442695, %v774_v31  ;;  %v673_v20 = vadd.f32 %v672_v6, %v482_v60  ;;  %v1534_v34 = vpop.f32.mrb[41].mxu0 }
 0x1a1   :  { %v1430_v25 = vpop.f32.mrb[41].mxu1  ;;  %v1694_v63 = vpop.eup %1693  ;;  %v871_v37 = vadd.f32 1.0, %v1692_v36 }
 0x1a2   :  { %v996_v57 = vsub.f32 1.0, %v1694_v63  ;;  %1703 = vpow2.f32 %v1123_v5  ;;  %v775_v24 = vadd.f32 %v2470_v28, %v673_v20  ;;  %v971_v13 = vmul.f32 %v1694_v63, %v2218_v40 }
 0x1a3   :  { %1705 = vrcp.f32 %v871_v37  ;;  %v677_v29 = vpop.f32.mrb[42].mxu0  ;;  %v492_v33 = vpop.f32.mrb[42].mxu1 }
 0x1a4   :  { %v1696_v12 = vpop.eup %1695  ;;  %v1021_v16 = vmul.f32 %v996_v57, %v2417_v61  ;;  %v1124_v9 = vmul.f32 -1.442695, %v775_v24  ;;  %v678_v21 = vadd.f32 %v677_v29, %v487_v59  ;;  %v1537_v58 = vpop.f32.mrb[43].mxu0 }
 0x1a5   :  { %v1433_v60 = vpop.f32.mrb[43].mxu1  ;;  %v1698_v31 = vpop.eup %1697  ;;  %v872_v6 = vadd.f32 1.0, %v1696_v12 }
 0x1a6   :  { %v1046_v34 = vadd.f32 %v1021_v16, %v971_v13  ;;  %v997_v36 = vsub.f32 1.0, %v1698_v31  ;;  %1707 = vpow2.f32 %v1124_v9  ;;  %v776_v5 = vadd.f32 %v2470_v28, %v678_v21 }
 0x1a7   :  { %1709 = vrcp.f32 %v872_v6  ;;  %v682_v20 = vpop.f32.mrb[44].mxu0  ;;  %v497_v25 = vpop.f32.mrb[44].mxu1  ;;  %v972_v40 = vmul.f32 %v1698_v31, %v2226_v41 }
 0x1a8   :  { %v1700_v37 = vpop.eup %1699  ;;  %1071 = vst [vmem:[#allocation11] sm:$0xff] %v1046_v34  ;;  %v1022_v57 = vmul.f32 %v997_v36, %v2421_v3  ;;  %v683_v61 = vadd.f32 %v682_v20, %v492_v33  ;;  %v1540_v59 = vpop.f32.mrb[45].mxu0  ;;  %v1125_v12 = vmul.f32 -1.442695, %v776_v5 }
 0x1a9   :  { %v1436_v63 = vpop.f32.mrb[45].mxu1  ;;  %v1702_v24 = vpop.eup %1701  ;;  %v873_v29 = vadd.f32 1.0, %v1700_v37 }
 0x1aa   :  { %v1047_v13 = vadd.f32 %v1022_v57, %v972_v40  ;;  %v998_v16 = vsub.f32 1.0, %v1702_v24  ;;  %v777_v9 = vadd.f32 %v2470_v28, %v683_v61  ;;  %v973_v21 = vmul.f32 %v1702_v24, %v2234_v42 }
 0x1ab   :  { %1711 = vrcp.f32 %v873_v29  ;;  %v687_v58 = vpop.f32.mrb[46].mxu0  ;;  %v502_v60 = vpop.f32.mrb[46].mxu1 }
 0x1ac   :  { %v1704_v6 = vpop.eup %1703  ;;  %1072 = vst [vmem:[#allocation11 + $0x8] sm:$0xff] %v1047_v13  ;;  %v1023_v41 = vmul.f32 %v998_v16, %v2425_v7  ;;  %1713 = vpow2.f32 %v1125_v12  ;;  %v1126_v3 = vmul.f32 -1.442695, %v777_v9  ;;  %v688_v33 = vadd.f32 %v687_v58, %v497_v25  ;;  %v1543_v31 = vpop.f32.mrb[47].mxu0 }
 0x1ad   :  { %v1439_v34 = vpop.f32.mrb[47].mxu1  ;;  %v1706_v36 = vpop.eup %1705  ;;  %v874_v5 = vadd.f32 1.0, %v1704_v6 }
 0x1ae   :  { %v1048_v20 = vadd.f32 %v1023_v41, %v973_v21  ;;  %v999_v37 = vsub.f32 1.0, %v1706_v36  ;;  %1715 = vpow2.f32 %v1126_v3  ;;  %v778_v42 = vadd.f32 %v2470_v28, %v688_v33 }
 0x1af   :  { %1717 = vrcp.f32 %v874_v5  ;;  %v692_v40 = vpop.f32.mrb[48].mxu0  ;;  %v507_v57 = vpop.f32.mrb[48].mxu1  ;;  %v974_v59 = vmul.f32 %v1706_v36, %v2242_v30 }
 0x1b0   :  { %v1708_v61 = vpop.eup %1707  ;;  %1073 = vst [vmem:[#allocation11 + $0x10] sm:$0xff] %v1048_v20  ;;  %v1024_v7 = vmul.f32 %v999_v37, %v2429_v10  ;;  %v693_v63 = vadd.f32 %v692_v40, %v502_v60  ;;  %v1546_v25 = vpop.f32.mrb[49].mxu0  ;;  %v1127_v13 = vmul.f32 -1.442695, %v778_v42 }
 0x1b1   :  { %v1442_v24 = vpop.f32.mrb[49].mxu1  ;;  %v1710_v29 = vpop.eup %1709  ;;  %v875_v12 = vadd.f32 1.0, %v1708_v61 }
 0x1b2   :  { %v1049_v16 = vadd.f32 %v1024_v7, %v974_v59  ;;  %v1000_v9 = vsub.f32 1.0, %v1710_v29  ;;  %v779_v21 = vadd.f32 %v2470_v28, %v693_v63  ;;  %v975_v58 = vmul.f32 %v1710_v29, %v2250_v38 }
 0x1b3   :  { %1719 = vrcp.f32 %v875_v12  ;;  %v697_v6 = vpop.f32.mrb[50].mxu0  ;;  %v512_v41 = vpop.f32.mrb[50].mxu1 }
 0x1b4   :  { %1074 = vst [vmem:[#allocation11 + $0x18] sm:$0xff] %v1049_v16  ;;  %v1025_v30 = vmul.f32 %v1000_v9, %v2433_v14  ;;  %1721 = vpow2.f32 %v1127_v13  ;;  %v1128_v10 = vmul.f32 -1.442695, %v779_v21  ;;  %v698_v60 = vadd.f32 %v697_v6, %v507_v57  ;;  %v1549_v3 = vpop.f32.mrb[51].mxu0  ;;  %v1445_v33 = vpop.f32.mrb[51].mxu1 }
 0x1b5   :  { %v1712_v31 = vpop.eup %1711 }
 0x1b6   :  { %v1714_v34 = vpop.eup %1713  ;;  %v1050_v36 = vadd.f32 %v1025_v30, %v975_v58  ;;  %v1001_v5 = vsub.f32 1.0, %v1712_v31  ;;  %1723 = vpow2.f32 %v1128_v10  ;;  %v780_v37 = vadd.f32 %v2470_v28, %v698_v60 }
 0x1b7   :  { %v876_v20 = vadd.f32 1.0, %v1714_v34  ;;  %v702_v38 = vpop.f32.mrb[52].mxu0  ;;  %v517_v42 = vpop.f32.mrb[52].mxu1  ;;  %v976_v61 = vmul.f32 %v1712_v31, %v2258_v43 }
 0x1b8   :  { %v1716_v40 = vpop.eup %1715  ;;  %1075 = vst [vmem:[#allocation11 + $0x20] sm:$0xff] %v1050_v36  ;;  %v1026_v14 = vmul.f32 %v1001_v5, %v2437_v18  ;;  %v703_v59 = vadd.f32 %v702_v38, %v512_v41  ;;  %v1552_v57 = vpop.f32.mrb[53].mxu0  ;;  %v1129_v24 = vmul.f32 -1.442695, %v780_v37 }
 0x1b9   :  { %v1448_v7 = vpop.f32.mrb[53].mxu1  ;;  %v1718_v63 = vpop.eup %1717  ;;  %1725 = vrcp.f32 %v876_v20  ;;  %v877_v25 = vadd.f32 1.0, %v1716_v40 }
 0x1ba   :  { %v1051_v29 = vadd.f32 %v1026_v14, %v976_v61  ;;  %v1002_v12 = vsub.f32 1.0, %v1718_v63  ;;  %v781_v13 = vadd.f32 %v2470_v28, %v703_v59  ;;  %v977_v16 = vmul.f32 %v1718_v63, %v2266_v44 }
 0x1bb   :  { %1727 = vrcp.f32 %v877_v25  ;;  %v707_v9 = vpop.f32.mrb[54].mxu0  ;;  %v522_v21 = vpop.f32.mrb[54].mxu1 }
 0x1bc   :  { %1076 = vst [vmem:[#allocation11 + $0x28] sm:$0xff] %v1051_v29  ;;  %v1027_v43 = vmul.f32 %v1002_v12, %v2441_v22  ;;  %1729 = vpow2.f32 %v1129_v24  ;;  %v1130_v18 = vmul.f32 -1.442695, %v781_v13  ;;  %v708_v58 = vadd.f32 %v707_v9, %v517_v42  ;;  %v1555_v6 = vpop.f32.mrb[55].mxu0  ;;  %v1451_v41 = vpop.f32.mrb[55].mxu1 }
 0x1bd   :  { %v1720_v30 = vpop.eup %1719 }
 0x1be   :  { %v1722_v10 = vpop.eup %1721  ;;  %v1052_v60 = vadd.f32 %v1027_v43, %v977_v16  ;;  %v1003_v3 = vsub.f32 1.0, %v1720_v30  ;;  %1731 = vpow2.f32 %v1130_v18  ;;  %v782_v31 = vadd.f32 %v2470_v28, %v708_v58 }
 0x1bf   :  { %v878_v33 = vadd.f32 1.0, %v1722_v10  ;;  %v712_v44 = vpop.f32.mrb[56].mxu0  ;;  %v527_v34 = vpop.f32.mrb[56].mxu1  ;;  %v978_v5 = vmul.f32 %v1720_v30, %v2274_v45 }
 0x1c0   :  { %v1724_v36 = vpop.eup %1723  ;;  %1077 = vst [vmem:[#allocation11 + $0x30] sm:$0xff] %v1052_v60  ;;  %v1028_v22 = vmul.f32 %v1003_v3, %v2445_v26  ;;  %v713_v20 = vadd.f32 %v712_v44, %v522_v21  ;;  %v1558_v37 = vpop.f32.mrb[57].mxu0  ;;  %v1131_v40 = vmul.f32 -1.442695, %v782_v31 }
 0x1c1   :  { %v1454_v38 = vpop.f32.mrb[57].mxu1  ;;  %1733 = vrcp.f32 %v878_v33  ;;  %v879_v42 = vadd.f32 1.0, %v1724_v36 }
 0x1c2   :  { %v1053_v61 = vadd.f32 %v1028_v22, %v978_v5  ;;  %v783_v14 = vadd.f32 %v2470_v28, %v713_v20 }
 0x1c3   :  { %v1726_v59 = vpop.eup %1725  ;;  %1735 = vrcp.f32 %v879_v42  ;;  %v717_v57 = vpop.f32.mrb[58].mxu0 }
 0x1c4   :  { %v532_v7 = vpop.f32.mrb[58].mxu1  ;;  %1078 = vst [vmem:[#allocation11 + $0x38] sm:$0xff] %v1053_v61  ;;  %v1004_v63 = vsub.f32 1.0, %v1726_v59  ;;  %1737 = vpow2.f32 %v1131_v40  ;;  %v1132_v25 = vmul.f32 -1.442695, %v783_v14  ;;  %v1561_v45 = vpop.f32.mrb[59].mxu0  ;;  %v718_v29 = vadd.f32 %v717_v57, %v527_v34 }
 0x1c5   :  { %v1457_v24 = vpop.f32.mrb[59].mxu1  ;;  %v1728_v26 = vpop.eup %1727  ;;  %v979_v13 = vmul.f32 %v1726_v59, %v2282_v46 }
 0x1c6   :  { %v1730_v12 = vpop.eup %1729  ;;  %v1029_v16 = vmul.f32 %v1004_v63, %v2449_v0  ;;  %v1005_v9 = vsub.f32 1.0, %v1728_v26  ;;  %1739 = vpow2.f32 %v1132_v25  ;;  %v784_v43 = vadd.f32 %v2470_v28, %v718_v29 }
 0x1c7   :  { %v880_v21 = vadd.f32 1.0, %v1730_v12  ;;  %v722_v18 = vpop.f32.mrb[60].mxu0  ;;  %v537_v58 = vpop.f32.mrb[60].mxu1  ;;  %v980_v30 = vmul.f32 %v1728_v26, %v2290_v48 }
 0x1c8   :  { %v1732_v6 = vpop.eup %1731  ;;  %v1054_v41 = vadd.f32 %v1029_v16, %v979_v13  ;;  %v1030_v10 = vmul.f32 %v1005_v9, %v2453_v35  ;;  %v723_v60 = vadd.f32 %v722_v18, %v532_v7  ;;  %v1564_v3 = vpop.f32.mrb[61].mxu0  ;;  %v1133_v31 = vmul.f32 -1.442695, %v784_v43 }
 0x1c9   :  { %v1460_v33 = vpop.f32.mrb[61].mxu1  ;;  %1741 = vrcp.f32 %v880_v21  ;;  %v881_v46 = vadd.f32 1.0, %v1732_v6 }
 0x1ca   :  { %1079 = vst [vmem:[#allocation11 + $0x40] sm:$0xff] %v1054_v41  ;;  %v1055_v0 = vadd.f32 %v1030_v10, %v980_v30  ;;  %v785_v44 = vadd.f32 %v2470_v28, %v723_v60 }
 0x1cb   :  { %v1734_v34 = vpop.eup %1733  ;;  %1743 = vrcp.f32 %v881_v46  ;;  %v727_v36 = vpop.f32.mrb[62].mxu0 }
 0x1cc   :  { %v542_v5 = vpop.f32.mrb[62].mxu1  ;;  %1080 = vst [vmem:[#allocation11 + $0x48] sm:$0xff] %v1055_v0  ;;  %v1006_v22 = vsub.f32 1.0, %v1734_v34  ;;  %1745 = vpow2.f32 %v1133_v31  ;;  %v1134_v48 = vmul.f32 -1.442695, %v785_v44  ;;  %v1567_v20 = vpop.f32.mrb[63].mxu0  ;;  %v728_v38 = vadd.f32 %v727_v36, %v537_v58 }
 0x1cd   :  { %v1463_v35 = vpop.f32.mrb[63].mxu1  ;;  %v1736_v37 = vpop.eup %1735  ;;  %v981_v40 = vmul.f32 %v1734_v34, %v2298_v49 }
 0x1ce   :  { %v1738_v42 = vpop.eup %1737  ;;  %v1031_v61 = vmul.f32 %v1006_v22, %v2457_v2  ;;  %v1007_v14 = vsub.f32 1.0, %v1736_v37  ;;  %1747 = vpow2.f32 %v1134_v48  ;;  %v786_v57 = vadd.f32 %v2470_v28, %v728_v38 }
 0x1cf   :  { %v882_v59 = vadd.f32 1.0, %v1738_v42  ;;  %v732_v7 = vpop.f32.mrb[64].mxu0  ;;  %v547_v63 = vpop.f32.mrb[64].mxu1  ;;  %v982_v24 = vmul.f32 %v1736_v37, %v2306_v50 }
 0x1d0   :  { %v1740_v25 = vpop.eup %1739  ;;  %v1056_v45 = vadd.f32 %v1031_v61, %v981_v40  ;;  %v1032_v26 = vmul.f32 %v1007_v14, %v2461_v1  ;;  %v733_v29 = vadd.f32 %v732_v7, %v542_v5  ;;  %v1570_v12 = vpop.f32.mrb[65].mxu0  ;;  %v1135_v16 = vmul.f32 -1.442695, %v786_v57 }
 0x1d1   :  { %v1466_v13 = vpop.f32.mrb[65].mxu1  ;;  %1749 = vrcp.f32 %v882_v59  ;;  %v883_v49 = vadd.f32 1.0, %v1740_v25 }
 0x1d2   :  { %1081 = vst [vmem:[#allocation11 + $0x50] sm:$0xff] %v1056_v45  ;;  %v1057_v2 = vadd.f32 %v1032_v26, %v982_v24  ;;  %v787_v9 = vadd.f32 %v2470_v28, %v733_v29 }
 0x1d3   :  { %v1742_v21 = vpop.eup %1741  ;;  %1751 = vrcp.f32 %v883_v49  ;;  %v737_v43 = vpop.f32.mrb[66].mxu0 }
 0x1d4   :  { %v552_v18 = vpop.f32.mrb[66].mxu1  ;;  %1082 = vst [vmem:[#allocation11 + $0x58] sm:$0xff] %v1057_v2  ;;  %v1008_v58 = vsub.f32 1.0, %v1742_v21  ;;  %1753 = vpow2.f32 %v1135_v16  ;;  %v1136_v50 = vmul.f32 -1.442695, %v787_v9  ;;  %v1573_v6 = vpop.f32.mrb[67].mxu0  ;;  %v738_v30 = vadd.f32 %v737_v43, %v547_v63 }
 0x1d5   :  { %v1469_v1 = vpop.f32.mrb[67].mxu1  ;;  %v1744_v41 = vpop.eup %1743  ;;  %v983_v60 = vmul.f32 %v1742_v21, %v2314_v51 }
 0x1d6   :  { %v1746_v10 = vpop.eup %1745  ;;  %v1033_v3 = vmul.f32 %v1008_v58, %v2465_v17  ;;  %v1009_v33 = vsub.f32 1.0, %v1744_v41  ;;  %1755 = vpow2.f32 %v1136_v50  ;;  %v788_v31 = vadd.f32 %v2470_v28, %v738_v30 }
 0x1d7   :  { %v884_v46 = vadd.f32 1.0, %v1746_v10  ;;  %v742_v0 = vpop.f32.mrb[68].mxu0  ;;  %v557_v44 = vpop.f32.mrb[68].mxu1  ;;  %v984_v5 = vmul.f32 %v1744_v41, %v2322_v52 }
 0x1d8   :  { %v1748_v34 = vpop.eup %1747  ;;  %v1058_v36 = vadd.f32 %v1033_v3, %v983_v60  ;;  %v1034_v22 = vmul.f32 %v1009_v33, %v2419_v62  ;;  %v743_v48 = vadd.f32 %v742_v0, %v552_v18  ;;  %v1576_v20 = vpop.f32.mrb[69].mxu0  ;;  %v1137_v37 = vmul.f32 -1.442695, %v788_v31 }
 0x1d9   :  { %v1472_v35 = vpop.f32.mrb[69].mxu1  ;;  %1757 = vrcp.f32 %v884_v46  ;;  %v885_v51 = vadd.f32 1.0, %v1748_v34 }
 0x1da   :  { %1083 = vst [vmem:[#allocation11 + $0x60] sm:$0xff] %v1058_v36  ;;  %v1059_v17 = vadd.f32 %v1034_v22, %v984_v5  ;;  %v789_v38 = vadd.f32 %v2470_v28, %v743_v48 }
 0x1db   :  { %v1750_v42 = vpop.eup %1749  ;;  %1759 = vrcp.f32 %v885_v51  ;;  %v747_v40 = vpop.f32.mrb[70].mxu0 }
 0x1dc   :  { %v562_v61 = vpop.f32.mrb[70].mxu1  ;;  %1084 = vst [vmem:[#allocation11 + $0x68] sm:$0xff] %v1059_v17  ;;  %v1010_v14 = vsub.f32 1.0, %v1750_v42  ;;  %1761 = vpow2.f32 %v1137_v37  ;;  %v1138_v52 = vmul.f32 -1.442695, %v789_v38  ;;  %v1579_v59 = vpop.f32.mrb[71].mxu0  ;;  %v748_v7 = vadd.f32 %v747_v40, %v557_v44 }
 0x1dd   :  { %v1475_v62 = vpop.f32.mrb[71].mxu1  ;;  %v1752_v57 = vpop.eup %1751  ;;  %v985_v25 = vmul.f32 %v1750_v42, %v2330_v53 }
 0x1de   :  { %v1754_v63 = vpop.eup %1753  ;;  %v1035_v45 = vmul.f32 %v1010_v14, %v2423_v4  ;;  %v1011_v24 = vsub.f32 1.0, %v1752_v57  ;;  %1763 = vpow2.f32 %v1138_v52  ;;  %v790_v29 = vadd.f32 %v2470_v28, %v748_v7 }
 0x1df   :  { %v886_v26 = vadd.f32 1.0, %v1754_v63  ;;  %v752_v12 = vpop.f32.mrb[72].mxu0  ;;  %v567_v13 = vpop.f32.mrb[72].mxu1  ;;  %v986_v2 = vmul.f32 %v1752_v57, %v2338_v54 }
 0x1e0   :  { %v1756_v49 = vpop.eup %1755  ;;  %v1060_v16 = vadd.f32 %v1035_v45, %v985_v25  ;;  %v1036_v9 = vmul.f32 %v1011_v24, %v2427_v8  ;;  %v753_v21 = vadd.f32 %v752_v12, %v562_v61  ;;  %v1582_v43 = vpop.f32.mrb[73].mxu0  ;;  %v1139_v58 = vmul.f32 -1.442695, %v790_v29 }
 0x1e1   :  { %v1478_v18 = vpop.f32.mrb[73].mxu1  ;;  %1765 = vrcp.f32 %v886_v26  ;;  %v887_v53 = vadd.f32 1.0, %v1756_v49  ;;  %v2583_v49 = vld [vmem:[#allocation17_spill] sm:$0xff] }
 0x1e2   :  { %1085 = vst [vmem:[#allocation11 + $0x70] sm:$0xff] %v1060_v16  ;;  %v1061_v4 = vadd.f32 %v1036_v9, %v986_v2  ;;  %v791_v50 = vadd.f32 %v2470_v28, %v753_v21  ;;  %v2584_v2 = vld [vmem:[#allocation21_spill] sm:$0xff]  ;;  %v2585_v21 = vld [vmem:[#allocation18_spill] sm:$0xff] }
 0x1e3   :  { %v1758_v6 = vpop.eup %1757  ;;  %1767 = vrcp.f32 %v887_v53  ;;  %v757_v1 = vpop.f32.mrb[74].mxu0  ;;  %v2586_v18 = vld [vmem:[#allocation22_spill] sm:$0xff] }
 0x1e4   :  { %1086 = vst [vmem:[#allocation11 + $0x78] sm:$0xff] %v1061_v4  ;;  %v1012_v41 = vsub.f32 1.0, %v1758_v6  ;;  %1769 = vpow2.f32 %v1139_v58  ;;  %v1140_v30 = vmul.f32 -1.442695, %v791_v50  ;;  %v1585_v54 = vpop.f32.mrb[75].mxu0  ;;  %v758_v8 = vadd.f32 %v757_v1, %v567_v13 }
 0x1e5   :  { %v1760_v10 = vpop.eup %1759  ;;  %v987_v3 = vmul.f32 %v1758_v6, %v2346_v32  ;;  %v2587_v6 = vld [vmem:[#allocation19_spill] sm:$0xff] }
 0x1e6   :  { %v1762_v60 = vpop.eup %1761  ;;  %v1037_v33 = vmul.f32 %v1012_v41, %v2431_v11  ;;  %v1013_v46 = vsub.f32 1.0, %v1760_v10  ;;  %1771 = vpow2.f32 %v1140_v30  ;;  %v792_v0 = vadd.f32 %v2470_v28, %v758_v8  ;;  %v2588_v41 = vld [vmem:[#allocation23_spill] sm:$0xff] }
 0x1e7   :  { %v888_v31 = vadd.f32 1.0, %v1762_v60  ;;  %v988_v36 = vmul.f32 %v1760_v10, %v2354_v39 }
 0x1e8   :  { %v1764_v44 = vpop.eup %1763  ;;  %v1062_v34 = vadd.f32 %v1037_v33, %v987_v3  ;;  %v1038_v5 = vmul.f32 %v1013_v46, %v2435_v15  ;;  %v1141_v48 = vmul.f32 -1.442695, %v792_v0 }
 0x1e9   :  { %1773 = vrcp.f32 %v888_v31  ;;  %v889_v22 = vadd.f32 1.0, %v1764_v44 }
 0x1ea   :  { %1087 = vst [vmem:[#allocation11 + $0x80] sm:$0xff] %v1062_v34  ;;  %v1063_v20 = vadd.f32 %v1038_v5, %v988_v36 }
 0x1eb   :  { %v1766_v35 = vpop.eup %1765  ;;  %1775 = vrcp.f32 %v889_v22 }
 0x1ec   :  { %1088 = vst [vmem:[#allocation11 + $0x88] sm:$0xff] %v1063_v20  ;;  %v1014_v32 = vsub.f32 1.0, %v1766_v35  ;;  %1777 = vpow2.f32 %v1141_v48  ;;  %v989_v28 = vmul.f32 %v1766_v35, %v2362_v47 }
 0x1ed   :  { %v1768_v11 = vpop.eup %1767 }
 0x1ee   :  { %v1770_v51 = vpop.eup %1769  ;;  %v1039_v37 = vmul.f32 %v1014_v32, %v2439_v19  ;;  %v1015_v17 = vsub.f32 1.0, %v1768_v11  ;;  %v990_v42 = vmul.f32 %v1768_v11, %v2370_v55  ;;  %v2581_v55 = vld [vmem:[#allocation16_spill] sm:$0xff] }
 0x1ef   :  { %v890_v39 = vadd.f32 1.0, %v1770_v51 }
 0x1f0   :  { %v1772_v38 = vpop.eup %1771  ;;  %v1064_v15 = vadd.f32 %v1039_v37, %v989_v28  ;;  %v1040_v40 = vmul.f32 %v1015_v17, %v2443_v23  ;;  %v2582_v23 = vld [vmem:[#allocation20_spill] sm:$0xff] }
 0x1f1   :  { %1779 = vrcp.f32 %v890_v39  ;;  %v891_v61 = vadd.f32 1.0, %v1772_v38 }
 0x1f2   :  { %1089 = vst [vmem:[#allocation11 + $0x90] sm:$0xff] %v1064_v15  ;;  %v1065_v14 = vadd.f32 %v1040_v40, %v990_v42 }
 0x1f3   :  { %v1774_v52 = vpop.eup %1773  ;;  %1781 = vrcp.f32 %v891_v61 }
 0x1f4   :  { %1090 = vst [vmem:[#allocation11 + $0x98] sm:$0xff] %v1065_v14  ;;  %v1016_v59 = vsub.f32 1.0, %v1774_v52  ;;  %v991_v19 = vmul.f32 %v1774_v52, %v2378_v56 }
 0x1f5   :  { %v1776_v62 = vpop.eup %1775 }
 0x1f6   :  { %v1778_v47 = vpop.eup %1777  ;;  %v1041_v57 = vmul.f32 %v1016_v59, %v2447_v27  ;;  %v1017_v7 = vsub.f32 1.0, %v1776_v62  ;;  %v992_v45 = vmul.f32 %v1776_v62, %v2581_v55 }
 0x1f7   :  { %v892_v63 = vadd.f32 1.0, %v1778_v47 }
 0x1f8   :  { %v1066_v25 = vadd.f32 %v1041_v57, %v991_v19  ;;  %v1042_v24 = vmul.f32 %v1017_v7, %v2582_v23 }
 0x1f9   :  { %1783 = vrcp.f32 %v892_v63 }
 0x1fa   :  { %1091 = vst [vmem:[#allocation11 + $0xa0] sm:$0xff] %v1066_v25  ;;  %v1067_v26 = vadd.f32 %v1042_v24, %v992_v45 }
 0x1fb   :  { %v1780_v29 = vpop.eup %1779 }
 0x1fc   :  { %1092 = vst [vmem:[#allocation11 + $0xa8] sm:$0xff] %v1067_v26  ;;  %v1018_v12 = vsub.f32 1.0, %v1780_v29  ;;  %v993_v16 = vmul.f32 %v1780_v29, %v2583_v49 }
 0x1fd   :  { %v1782_v13 = vpop.eup %1781 }
 0x1fe   :  { %v1043_v56 = vmul.f32 %v1018_v12, %v2584_v2  ;;  %v1019_v9 = vsub.f32 1.0, %v1782_v13  ;;  %v994_v43 = vmul.f32 %v1782_v13, %v2585_v21 }
 0x200   :  { %v1068_v27 = vadd.f32 %v1043_v56, %v993_v16  ;;  %v1044_v53 = vmul.f32 %v1019_v9, %v2586_v18 }
 0x202   :  { %1093 = vst [vmem:[#allocation11 + $0xb0] sm:$0xff] %v1068_v27  ;;  %v1069_v58 = vadd.f32 %v1044_v53, %v994_v43 }
 0x203   :  { %v1784_v4 = vpop.eup %1783 }
 0x204   :  { %1094 = vst [vmem:[#allocation11 + $0xb8] sm:$0xff] %v1069_v58  ;;  %v1020_v50 = vsub.f32 1.0, %v1784_v4  ;;  %v995_v1 = vmul.f32 %v1784_v4, %v2587_v6 }
 0x206   :  { %v1045_v30 = vmul.f32 %v1020_v50, %v2588_v41 }
 0x208   :  { %v1070_v54 = vadd.f32 %v1045_v30, %v995_v1 }
 0x20a   :  { %1095 = vst [vmem:[#allocation11 + $0xc0] sm:$0xff] %v1070_v54 }
 0x20b   :  { %1906 = shalt.err (!%p1903_p2)
}
 0x20c   :  { %s1907_s14 = scalar_lea.hbm %s2568_s6, 3200 }
 0x20d   :  { %p1908_p3 = scmp.ne.s32.totalorder %s2568_s6, %s1907_s14  ;;  %p1911_p4 = scmp.lt.u32.totalorder %s1907_s14, %s2568_s6 }
 0x20f   :  { %p1913_p5 = pnand %p1911_p4, %p1908_p3 }
 0x211   :  { %1916 = shalt.err (!%p1913_p5)
}
 0x212   :  { %1107 = dma.vmem_to_hbm [thread:$0]  %s1102_s3, 3200, %s2568_s6, [#allocation4], %s1927_s9, %s1927_s9, %s1928_s10  }
 0x213   :  { %1923 = dma.done.wait [#allocation4], 3200  }
 0x214   :  { %1924 = vsyncadd [#allocation4], 4294964096 }
 0x215   :  { %1111 = vsyncpa [#allocation3], 1 }
 0x216   :  { %1112 = vsyncpa [#allocation6], 1 }
 0x217   :  { %1113 = vsyncpa [#allocation9], 1 }
 0x218   :  { %1114 = vsyncpa [#allocation4], 1 }

</bundles_post_ra>
